<compile_context>
chip_gen: v7x
topology: tpu7x:2x2x1
jax: 0.10.0
libtpu: 0.0.40
codegen_flags: <defaults>
</compile_context>

<pallas_src>
import functools
import math

import jax
import jax.numpy as jnp
from jax.experimental import pallas as pl
from jax.experimental.pallas import tpu as pltpu


def _round_up(x, m):
    return ((x + m - 1) // m) * m


# ----------------------------------------------------------------------------
# Generic matmul + bias (+ relu) kernel — used for the hoisted gate projection.
# ----------------------------------------------------------------------------
def _matmul_bias_kernel(x_ref, w_ref, b_ref, o_ref, *, relu):
    y = jnp.dot(x_ref[...], w_ref[...],
                preferred_element_type=jnp.float32) + b_ref[...]
    if relu:
        y = jnp.maximum(y, 0.0)
    o_ref[...] = y


def matmul_bias(x, w, b, relu=False):
    M = x.shape[0]
    N = w.shape[1]
    return pl.pallas_call(
        functools.partial(_matmul_bias_kernel, relu=relu),
        out_shape=jax.ShapeDtypeStruct((M, N), jnp.float32),
    )(x, w, b)


# ----------------------------------------------------------------------------
# Fused bidirectional LSTM recurrence.
#   gx_ref : (T, B, 4*D)  precomputed x-projection gates, gate-major, each gate
#            block is [fwd Hp | rev Hp] (rev lanes already time-reversed).
#   m_ref  : (T, B, D)    mask pre-broadcast (fwd lanes / time-reversed rev).
#   wh_ref : (D, 4*D)     block-diagonal recurrent weights (fwd/rev).
# One invocation, lax.fori_loop over time; h/c carried as loop values.
# ----------------------------------------------------------------------------
def _lstm_scan_kernel(gx_ref, m_ref, wh_ref, *out_refs, want_c):
    if want_c:
        h_out_ref, c_out_ref = out_refs
    else:
        (h_out_ref,) = out_refs
        c_out_ref = None

    T, B, G = gx_ref.shape
    D = G // 4
    wh = wh_ref[...]                       # hoisted load, stays in vregs/VMEM

    def body(t, carry):
        h_prev, c_prev = carry
        gates = gx_ref[t] + jnp.dot(h_prev, wh,
                                    preferred_element_type=jnp.float32)
        m = m_ref[t]
        i = jax.nn.sigmoid(gates[:, 0:D])
        f = jax.nn.sigmoid(gates[:, D:2 * D])
        g = jnp.tanh(gates[:, 2 * D:3 * D])
        o = jax.nn.sigmoid(gates[:, 3 * D:4 * D])

        c_new = f * c_prev + i * g
        h_new = o * jnp.tanh(c_new)

        c_t = m * c_new + (1.0 - m) * c_prev
        h_t = m * h_new + (1.0 - m) * h_prev

        h_out_ref[t] = h_t
        if want_c:
            c_out_ref[t] = c_t
        return (h_t, c_t)

    zeros = jnp.zeros((B, D), jnp.float32)
    jax.lax.fori_loop(0, T, body, (zeros, zeros), unroll=True)


def lstm_scan(gates_x, mask_comb, wh_comb, want_c):
    T, B, G = gates_x.shape
    D = G // 4
    h_shape = jax.ShapeDtypeStruct((T, B, D), jnp.float32)
    out_shape = (h_shape, jax.ShapeDtypeStruct((T, B, D), jnp.float32)) \
        if want_c else h_shape
    res = pl.pallas_call(
        functools.partial(_lstm_scan_kernel, want_c=want_c),
        out_shape=out_shape,
    )(gates_x, mask_comb, wh_comb)
    if want_c:
        return res[0], res[1]
    return res, None


# ----------------------------------------------------------------------------
# Fused char-CNN kernel: three conv widths (1, 3, 5) + relu + max-pool in one
# pass; x is loaded once; each conv is a single im2col matmul (K = krows * E);
# output is lane-padded to `out_pad` (sliced in the wrapper).
# ----------------------------------------------------------------------------
def _charconv_fused_kernel(x_ref, w1_ref, w3_ref, w5_ref, b_ref, o_ref,
                           *, nout, out_pad):
    x = x_ref[...]                                   # (N, C, E)
    N, C, E = x.shape
    b = b_ref[...]                                   # (1, 3*nout)

    outs = []
    for idx, (krows, w_ref) in enumerate([(1, w1_ref), (3, w3_ref), (5, w5_ref)]):
        P = C - krows + 1
        # im2col: (N, P, krows*E) built from static row-shifts of the single x.
        patches = jnp.concatenate([x[:, r:r + P, :] for r in range(krows)],
                                  axis=2).reshape(N * P, krows * E)
        y = jnp.dot(patches, w_ref[...],
                    preferred_element_type=jnp.float32)          # (N*P, nout)
        y = y + b[:, idx * nout:(idx + 1) * nout]
        y = jnp.maximum(y, 0.0).reshape(N, P, nout)
        outs.append(jnp.max(y, axis=1))                          # (N, nout)

    out = jnp.concatenate(outs, axis=1)                          # (N, 3*nout)
    pad = out_pad - 3 * nout
    if pad > 0:
        out = jnp.concatenate([out, jnp.zeros((N, pad), jnp.float32)], axis=1)
    o_ref[...] = out


def char_conv_fused(x, w1, w3, w5, b, nout):
    N = x.shape[0]
    out_pad = _round_up(3 * nout, 128)
    out = pl.pallas_call(
        functools.partial(_charconv_fused_kernel, nout=nout, out_pad=out_pad),
        out_shape=jax.ShapeDtypeStruct((N, out_pad), jnp.float32),
    )(x, w1, w3, w5, b)
    return out[:, :3 * nout]


# ----------------------------------------------------------------------------
# Composite-vector kernel: masked mean / max / gate-norm-weighted mean.
# Semantics mirror the PyTorch reference exactly (max is over output*mask,
# i.e. masked positions contribute 0, and the divides match torch's).
# ----------------------------------------------------------------------------
def _composite_kernel(out_ref, gate_ref, mask_ref, rep_ref):
    out = out_ref[...]                                    # (T, B, 2H)
    gate = gate_ref[...]                                  # (T, B, 2H)
    m = mask_ref[...]                                     # (T, B, 1)
    gate_norm = jnp.sqrt(jnp.sum(gate * gate, axis=2, keepdims=True))
    out_m = out * m
    gate_m = gate_norm * m
    # approx=True would use the EUP rcp; keep exact to match reference numerics
    inv_msum = pl.reciprocal(jnp.sum(m, axis=0), approx=False)       # (B, 1)
    inv_gsum = pl.reciprocal(jnp.sum(gate_m, axis=0), approx=False)  # (B, 1)
    mean = jnp.sum(out_m, axis=0) * inv_msum                         # (B, 2H)
    maxi = jnp.max(out_m, axis=0)                                    # (B, 2H)
    gate2 = jnp.sum(out * gate_m, axis=0) * inv_gsum                 # (B, 2H)
    rep_ref[...] = jnp.concatenate([mean, maxi, gate2], axis=1)


def composite(out, gate, mask3):
    T, B, D2 = out.shape
    return pl.pallas_call(
        _composite_kernel,
        out_shape=jax.ShapeDtypeStruct((B, 3 * D2), jnp.float32),
    )(out, gate, mask3)


# ----------------------------------------------------------------------------
# Fused classifier head: logit_0 build + Linear1/relu + concat + Linear2/relu
# + Linear3, all in VMEM.  lin3 weights are pre-padded to 128 output lanes so
# the final store is lane-dense; wrapper slices to 3 classes.
# (Dropout p=0.1 between layers is identity in eval mode.)
# ----------------------------------------------------------------------------
def _mlp_kernel(p_ref, h_ref, w1_ref, b1_ref, w2_ref, b2_ref, w3_ref, b3_ref,
                o_ref):
    p = p_ref[...]
    h = h_ref[...]
    logit0 = jnp.concatenate([p, h, jnp.abs(p - h), p * h], axis=1)  # (B, 24H)
    l1 = jnp.dot(logit0, w1_ref[...],
                 preferred_element_type=jnp.float32) + b1_ref[...]
    l1 = jnp.maximum(l1, 0.0)
    l2in = jnp.concatenate([logit0, l1], axis=1)                     # (B, 25H)
    l2 = jnp.dot(l2in, w2_ref[...],
                 preferred_element_type=jnp.float32) + b2_ref[...]
    l2 = jnp.maximum(l2, 0.0)
    o_ref[...] = jnp.dot(l2, w3_ref[...],
                         preferred_element_type=jnp.float32) + b3_ref[...]


def mlp_head(p_comp, h_comp, w1, b1, w2, b2, w3p, b3p):
    B = p_comp.shape[0]
    out_pad = w3p.shape[1]
    out = pl.pallas_call(
        _mlp_kernel,
        out_shape=jax.ShapeDtypeStruct((B, out_pad), jnp.float32),
    )(p_comp, h_comp, w1, b1, w2, b2, w3p, b3p)
    return out[:, :3]


# ----------------------------------------------------------------------------
# Model glue (XLA): embedding gathers, reversal, concatenation, weight prep.
# ----------------------------------------------------------------------------
def build_mask_comb(mask, Hp):
    """mask: (T, B) -> (T, B, 2*Hp): fwd lanes / time-reversed rev lanes."""
    T, B = mask.shape
    m3 = mask[:, :, None]
    mf = jnp.broadcast_to(m3, (T, B, Hp))
    mr = jnp.broadcast_to(m3[::-1], (T, B, Hp))
    return jnp.concatenate([mf, mr], axis=2)


def bilstm(layer, x, mask_comb, H, Hp, want_c):
    """One bidirectional LSTM layer (fwd + rev fused)."""
    T, B, Din = x.shape
    D = 2 * Hp
    # Hoisted input projection: one big MXU matmul for BOTH directions.
    gall = matmul_bias(x.reshape(T * B, Din), layer["wx_big"], layer["b_big"])
    gall = gall.reshape(T, B, 2, 4, Hp)
    gf = gall[:, :, 0]                       # fwd gates, gate-major (T,B,4,Hp)
    gr = gall[:, :, 1][::-1]                 # rev gates, time-reversed
    gates_x = jnp.concatenate([gf, gr], axis=3).reshape(T, B, 4 * D)

    h_seq, c_seq = lstm_scan(gates_x, mask_comb, layer["wh_comb"], want_c)

    h_f = h_seq[:, :, :H]
    h_r = h_seq[:, :, Hp:Hp + H][::-1]       # back to forward time order
    if want_c:
        c_f = c_seq[:, :, :H]
        c_r = c_seq[:, :, Hp:Hp + H][::-1]
        return h_f, h_r, c_f, c_r
    return h_f, h_r, None, None


def encode(prep, emb, mask):
    H, Hp = prep["H"], prep["Hp"]
    mask_comb = build_mask_comb(mask, Hp)

    h1f, h1r, _, _ = bilstm(prep["layer1"], emb, mask_comb, H, Hp, want_c=False)
    inp2 = jnp.concatenate([h1f, h1r, emb], axis=2)
    h2f, h2r, _, _ = bilstm(prep["layer2"], inp2, mask_comb, H, Hp, want_c=False)
    inp3 = jnp.concatenate([h2f, h2r, emb], axis=2)
    h3f, h3r, c3f, c3r = bilstm(prep["layer3"], inp3, mask_comb, H, Hp,
                                want_c=True)

    out = jnp.concatenate([h3f, h3r], axis=2)      # hidden sequence
    gate = jnp.concatenate([c3f, c3r], axis=2)     # cell ("gate") sequence
    return out, gate


def compute_char_embeddings(prep, char_ids, char_mask):
    T, B, C = char_ids.shape
    E = prep["char_emb"].shape[1]
    nout = prep["char_nout"]
    emb = prep["char_emb"][char_ids.reshape(-1)].reshape(T, B, C, E)
    emb = emb * char_mask[..., None]
    x = emb.reshape(T * B, C, E)
    out = char_conv_fused(x, prep["conv_w1"], prep["conv_w3"], prep["conv_w5"],
                          prep["conv_b"], nout)
    return out.reshape(T, B, 3 * nout)


def nli_forward(prep, premise, char_premise, premise_mask, char_premise_mask,
                hypothesis, char_hypothesis, hypothesis_mask,
                char_hypothesis_mask):
    dim_word = prep["word_emb"].shape[1]
    Tp, B = premise.shape
    Th, _ = hypothesis.shape

    p_char = compute_char_embeddings(prep, char_premise, char_premise_mask)
    h_char = compute_char_embeddings(prep, char_hypothesis, char_hypothesis_mask)

    p_word = prep["word_emb"][premise.reshape(-1)].reshape(Tp, B, dim_word)
    h_word = prep["word_emb"][hypothesis.reshape(-1)].reshape(Th, B, dim_word)

    # dropout(p=0.1) is identity in eval mode
    p_emb = jnp.concatenate([p_word, p_char], axis=2)
    h_emb = jnp.concatenate([h_word, h_char], axis=2)

    p_out, p_gate = encode(prep, p_emb, premise_mask)
    h_out, h_gate = encode(prep, h_emb, hypothesis_mask)

    p_comp = composite(p_out, p_gate, premise_mask[:, :, None])
    h_comp = composite(h_out, h_gate, hypothesis_mask[:, :, None])

    return mlp_head(p_comp, h_comp, prep["lin1_w"], prep["lin1_b"],
                    prep["lin2_w"], prep["lin2_b"],
                    prep["lin3_wp"], prep["lin3_bp"])


# ----------------------------------------------------------------------------
# Parameter init (mirrors module __init__ shapes / init ranges) + preparation
# into the padded / fused layouts the kernels consume.
# ----------------------------------------------------------------------------
def init_params(key, *, dim_word, char_nout, dim_char_emb, dim_hidden,
                num_words, alphabet_len):
    keys = jax.random.split(key, 16)
    H = dim_hidden
    dim_emb = dim_word + 3 * char_nout

    def uni(k, shape, a=0.1):
        return jax.random.uniform(k, shape, jnp.float32, -a, a)

    params = {"dim_hidden": H, "char_nout": char_nout}
    # TODO(synk): no pretrained word-vector file load; normal(0, 0.01) init only.
    params["word_emb"] = 0.01 * jax.random.normal(
        keys[0], (num_words, dim_word), jnp.float32)

    char_emb = uni(keys[1], (alphabet_len + 1, dim_char_emb))
    params["char_emb"] = char_emb.at[0].set(0.0)          # padding_idx=0

    convs = []
    for idx, krows in enumerate([1, 3, 5]):
        wb = math.sqrt(3.0 * krows * dim_char_emb)
        w = jax.random.uniform(keys[2 + idx],
                               (char_nout, 1, krows, dim_char_emb),
                               jnp.float32, -1.0 / wb, 1.0 / wb)
        w = jnp.transpose(w[:, 0], (1, 2, 0))             # (krows, E, nout)
        convs.append((krows, w, jnp.zeros((1, char_nout), jnp.float32)))
    params["convs"] = convs

    def lstm_params(k, din):
        # TODO(synk): the reference LSTM class is not in the source file;
        # assume standard gates (i, f, g, o) with Wx (din,4H), Wh (H,4H), b.
        k1, k2, k3 = jax.random.split(k, 3)
        return (uni(k1, (din, 4 * H)), uni(k2, (H, 4 * H)), uni(k3, (1, 4 * H)))

    params["lstm1"] = lstm_params(keys[5], dim_emb)
    params["lstm1_rev"] = lstm_params(keys[6], dim_emb)
    params["lstm2"] = lstm_params(keys[7], dim_emb + 2 * H)
    params["lstm2_rev"] = lstm_params(keys[8], dim_emb + 2 * H)
    params["lstm3"] = lstm_params(keys[9], dim_emb + 2 * H)
    params["lstm3_rev"] = lstm_params(keys[10], dim_emb + 2 * H)

    params["lin1_w"] = uni(keys[11], (24 * H, H))
    params["lin1_b"] = jnp.zeros((1, H), jnp.float32)
    params["lin2_w"] = uni(keys[12], (25 * H, H))
    params["lin2_b"] = jnp.zeros((1, H), jnp.float32)
    params["lin3_w"] = uni(keys[13], (H, 3))
    params["lin3_b"] = jnp.zeros((1, 3), jnp.float32)
    return params


def _pad_gate_cols(w, H, Hp):
    """(rows, 4H) -> (rows, 4*Hp); gate g's H cols land at [g*Hp, g*Hp+H)."""
    rows = w.shape[0]
    out = jnp.zeros((rows, 4 * Hp), jnp.float32)
    for g in range(4):
        out = out.at[:, g * Hp:g * Hp + H].set(w[:, g * H:(g + 1) * H])
    return out


def _build_layer(fwd, rev, H, Hp):
    wx_f, wh_f, b_f = fwd
    wx_r, wh_r, b_r = rev
    D = 2 * Hp
    wx_big = jnp.concatenate([_pad_gate_cols(wx_f, H, Hp),
                              _pad_gate_cols(wx_r, H, Hp)], axis=1)
    b_big = jnp.concatenate([_pad_gate_cols(b_f, H, Hp),
                             _pad_gate_cols(b_r, H, Hp)], axis=1)
    whf_p = _pad_gate_cols(wh_f, H, Hp)                    # (H, 4*Hp)
    whr_p = _pad_gate_cols(wh_r, H, Hp)
    wh_comb = jnp.zeros((D, 4 * D), jnp.float32)
    for g in range(4):
        wh_comb = wh_comb.at[0:H, g * D:g * D + Hp].set(
            whf_p[:, g * Hp:(g + 1) * Hp])
        wh_comb = wh_comb.at[Hp:Hp + H, g * D + Hp:g * D + 2 * Hp].set(
            whr_p[:, g * Hp:(g + 1) * Hp])
    return {"wx_big": wx_big, "b_big": b_big, "wh_comb": wh_comb}


def prepare_params(raw):
    H = raw["dim_hidden"]
    Hp = _round_up(H, 128)                       # lane-aligned hidden padding
    nout = raw["char_nout"]
    prep = {
        "H": H, "Hp": Hp, "char_nout": nout,
        "word_emb": raw["word_emb"], "char_emb": raw["char_emb"],
        "lin1_w": raw["lin1_w"], "lin1_b": raw["lin1_b"],
        "lin2_w": raw["lin2_w"], "lin2_b": raw["lin2_b"],
    }
    # conv weights -> im2col layout (krows*E, nout); biases concatenated.
    (k1, w1, b1), (k3, w3, b3), (k5, w5, b5) = raw["convs"]
    E = w1.shape[1]
    prep["conv_w1"] = w1.reshape(k1 * E, nout)
    prep["conv_w3"] = w3.reshape(k3 * E, nout)
    prep["conv_w5"] = w5.reshape(k5 * E, nout)
    prep["conv_b"] = jnp.concatenate([b1, b3, b5], axis=1)        # (1, 3*nout)
    # fused bidirectional LSTM layers
    prep["layer1"] = _build_layer(raw["lstm1"], raw["lstm1_rev"], H, Hp)
    prep["layer2"] = _build_layer(raw["lstm2"], raw["lstm2_rev"], H, Hp)
    prep["layer3"] = _build_layer(raw["lstm3"], raw["lstm3_rev"], H, Hp)
    # lin3 padded to 128 lanes (lane-dense final store; sliced in wrapper)
    out_pad = 128
    prep["lin3_wp"] = jnp.zeros((H, out_pad), jnp.float32).at[:, :3].set(
        raw["lin3_w"])
    prep["lin3_bp"] = jnp.zeros((1, out_pad), jnp.float32).at[:, :3].set(
        raw["lin3_b"])
    return prep


if __name__ == "__main__":
    alphabet = (' abcdefghijklmnopqrstuvwxyzABCDEFGHIJKLMNOPQRSTUVWXYZ'
                '0123456789,;.!?:\'"/\\|_@#$%^&*~`+-=<>()[]{}')
    dim_word, char_nout, dim_char_emb, dim_hidden = 16, 8, 8, 16
    num_words = 50
    Tp, Th, B, Cchars = 6, 5, 2, 12

    raw = init_params(jax.random.PRNGKey(0),
                      dim_word=dim_word, char_nout=char_nout,
                      dim_char_emb=dim_char_emb, dim_hidden=dim_hidden,
                      num_words=num_words, alphabet_len=len(alphabet))
    prep = prepare_params(raw)

    kp, kh, kcp, kch = jax.random.split(jax.random.PRNGKey(1), 4)
    premise = jax.random.randint(kp, (Tp, B), 1, num_words, dtype=jnp.int32)
    hypothesis = jax.random.randint(kh, (Th, B), 1, num_words, dtype=jnp.int32)
    char_premise = jax.random.randint(kcp, (Tp, B, Cchars), 0,
                                      len(alphabet) + 1, dtype=jnp.int32)
    char_hypothesis = jax.random.randint(kch, (Th, B, Cchars), 0,
                                         len(alphabet) + 1, dtype=jnp.int32)

    premise_mask = jnp.ones((Tp, B), jnp.float32).at[Tp - 1, 1].set(0.0)
    hypothesis_mask = jnp.ones((Th, B), jnp.float32).at[Th - 1, 0].set(0.0)
    char_premise_mask = jnp.ones((Tp, B, Cchars), jnp.float32)
    char_hypothesis_mask = jnp.ones((Th, B, Cchars), jnp.float32)

    logits = nli_forward(prep, premise, char_premise, premise_mask,
                         char_premise_mask, hypothesis, char_hypothesis,
                         hypothesis_mask, char_hypothesis_mask)
    jax.block_until_ready(logits)
    assert logits.shape == (B, 3)
    print("KERNEL_OK")
</pallas_src>

<mosaic_0001>
module attributes {stable_mosaic.version = 11 : i64} {
  func.func @_charconv_fused_kernel(%arg0: memref<12x12x8xf32, #tpu.memory_space<vmem>>, %arg1: memref<8x8xf32, #tpu.memory_space<vmem>>, %arg2: memref<24x8xf32, #tpu.memory_space<vmem>>, %arg3: memref<40x8xf32, #tpu.memory_space<vmem>>, %arg4: memref<1x24xf32, #tpu.memory_space<vmem>>, %arg5: memref<12x128xf32, #tpu.memory_space<vmem>>) attributes {dimension_semantics = [], scalar_prefetch = 0 : i64, scratch_operands = 0 : i64, tpu.core_type = #tpu.core_type<tc>} {
    %c0 = arith.constant 0 : index
    %c0_0 = arith.constant 0 : index
    %c0_1 = arith.constant 0 : index
    %0 = vector.load %arg0[%c0, %c0_0, %c0_1] : memref<12x12x8xf32, #tpu.memory_space<vmem>>, vector<12x12x8xf32>
    %c0_2 = arith.constant 0 : index
    %c0_3 = arith.constant 0 : index
    %1 = vector.load %arg4[%c0_2, %c0_3] : memref<1x24xf32, #tpu.memory_space<vmem>>, vector<1x24xf32>
    %2 = vector.shape_cast %0 : vector<12x12x8xf32> to vector<144x8xf32>
    %c0_4 = arith.constant 0 : index
    %c0_5 = arith.constant 0 : index
    %3 = vector.load %arg1[%c0_4, %c0_5] : memref<8x8xf32, #tpu.memory_space<vmem>>, vector<8x8xf32>
    %cst = arith.constant dense<0.000000e+00> : vector<144x8xf32>
    %4 = tpu.matmul %2, %3, %cst {dimension_numbers = #tpu.dot_dimension_numbers<[1], [0], [0], [1], [0, 0, 1, 1], [], []>} : vector<144x8xf32>, vector<8x8xf32>, vector<144x8xf32> -> vector<144x8xf32>
    %5 = vector.extract_strided_slice %1 {offsets = [0, 0], sizes = [1, 8], strides = [1, 1]} : vector<1x24xf32> to vector<1x8xf32>
    %6 = vector.broadcast %5 : vector<1x8xf32> to vector<144x8xf32>
    %7 = arith.addf %4, %6 : vector<144x8xf32>
    %cst_6 = arith.constant 0.000000e+00 : f32
    %8 = vector.broadcast %cst_6 : f32 to vector<144x8xf32>
    %9 = arith.maximumf %7, %8 : vector<144x8xf32>
    %10 = vector.shape_cast %9 : vector<144x8xf32> to vector<12x12x8xf32>
    %cst_7 = arith.constant dense<0xFF800000> : vector<12x8xf32>
    %11 = vector.multi_reduction <maximumf>, %10, %cst_7 [1] : vector<12x12x8xf32> to vector<12x8xf32>
    %12 = vector.extract_strided_slice %0 {offsets = [0, 0, 0], sizes = [12, 10, 8], strides = [1, 1, 1]} : vector<12x12x8xf32> to vector<12x10x8xf32>
    %13 = vector.extract_strided_slice %0 {offsets = [0, 1, 0], sizes = [12, 10, 8], strides = [1, 1, 1]} : vector<12x12x8xf32> to vector<12x10x8xf32>
    %14 = vector.extract_strided_slice %0 {offsets = [0, 2, 0], sizes = [12, 10, 8], strides = [1, 1, 1]} : vector<12x12x8xf32> to vector<12x10x8xf32>
    %15 = tpu.concatenate %12, %13, %14 in 2 : vector<12x10x8xf32>, vector<12x10x8xf32>, vector<12x10x8xf32> -> vector<12x10x24xf32>
    %16 = vector.shape_cast %15 : vector<12x10x24xf32> to vector<120x24xf32>
    %c0_8 = arith.constant 0 : index
    %c0_9 = arith.constant 0 : index
    %17 = vector.load %arg2[%c0_8, %c0_9] : memref<24x8xf32, #tpu.memory_space<vmem>>, vector<24x8xf32>
    %cst_10 = arith.constant dense<0.000000e+00> : vector<120x8xf32>
    %18 = tpu.matmul %16, %17, %cst_10 {dimension_numbers = #tpu.dot_dimension_numbers<[1], [0], [0], [1], [0, 0, 1, 1], [], []>} : vector<120x24xf32>, vector<24x8xf32>, vector<120x8xf32> -> vector<120x8xf32>
    %19 = vector.extract_strided_slice %1 {offsets = [0, 8], sizes = [1, 8], strides = [1, 1]} : vector<1x24xf32> to vector<1x8xf32>
    %20 = vector.broadcast %19 : vector<1x8xf32> to vector<120x8xf32>
    %21 = arith.addf %18, %20 : vector<120x8xf32>
    %cst_11 = arith.constant 0.000000e+00 : f32
    %22 = vector.broadcast %cst_11 : f32 to vector<120x8xf32>
    %23 = arith.maximumf %21, %22 : vector<120x8xf32>
    %24 = vector.shape_cast %23 : vector<120x8xf32> to vector<12x10x8xf32>
    %cst_12 = arith.constant dense<0xFF800000> : vector<12x8xf32>
    %25 = vector.multi_reduction <maximumf>, %24, %cst_12 [1] : vector<12x10x8xf32> to vector<12x8xf32>
    %26 = vector.extract_strided_slice %0 {offsets = [0, 0, 0], sizes = [12, 8, 8], strides = [1, 1, 1]} : vector<12x12x8xf32> to vector<12x8x8xf32>
    %27 = vector.extract_strided_slice %0 {offsets = [0, 1, 0], sizes = [12, 8, 8], strides = [1, 1, 1]} : vector<12x12x8xf32> to vector<12x8x8xf32>
    %28 = vector.extract_strided_slice %0 {offsets = [0, 2, 0], sizes = [12, 8, 8], strides = [1, 1, 1]} : vector<12x12x8xf32> to vector<12x8x8xf32>
    %29 = vector.extract_strided_slice %0 {offsets = [0, 3, 0], sizes = [12, 8, 8], strides = [1, 1, 1]} : vector<12x12x8xf32> to vector<12x8x8xf32>
    %30 = vector.extract_strided_slice %0 {offsets = [0, 4, 0], sizes = [12, 8, 8], strides = [1, 1, 1]} : vector<12x12x8xf32> to vector<12x8x8xf32>
    %31 = tpu.concatenate %26, %27, %28, %29, %30 in 2 : vector<12x8x8xf32>, vector<12x8x8xf32>, vector<12x8x8xf32>, vector<12x8x8xf32>, vector<12x8x8xf32> -> vector<12x8x40xf32>
    %32 = vector.shape_cast %31 : vector<12x8x40xf32> to vector<96x40xf32>
    %c0_13 = arith.constant 0 : index
    %c0_14 = arith.constant 0 : index
    %33 = vector.load %arg3[%c0_13, %c0_14] : memref<40x8xf32, #tpu.memory_space<vmem>>, vector<40x8xf32>
    %cst_15 = arith.constant dense<0.000000e+00> : vector<96x8xf32>
    %34 = tpu.matmul %32, %33, %cst_15 {dimension_numbers = #tpu.dot_dimension_numbers<[1], [0], [0], [1], [0, 0, 1, 1], [], []>} : vector<96x40xf32>, vector<40x8xf32>, vector<96x8xf32> -> vector<96x8xf32>
    %35 = vector.extract_strided_slice %1 {offsets = [0, 16], sizes = [1, 8], strides = [1, 1]} : vector<1x24xf32> to vector<1x8xf32>
    %36 = vector.broadcast %35 : vector<1x8xf32> to vector<96x8xf32>
    %37 = arith.addf %34, %36 : vector<96x8xf32>
    %cst_16 = arith.constant 0.000000e+00 : f32
    %38 = vector.broadcast %cst_16 : f32 to vector<96x8xf32>
    %39 = arith.maximumf %37, %38 : vector<96x8xf32>
    %40 = vector.shape_cast %39 : vector<96x8xf32> to vector<12x8x8xf32>
    %cst_17 = arith.constant dense<0xFF800000> : vector<12x8xf32>
    %41 = vector.multi_reduction <maximumf>, %40, %cst_17 [1] : vector<12x8x8xf32> to vector<12x8xf32>
    %42 = tpu.concatenate %11, %25, %41 in 1 : vector<12x8xf32>, vector<12x8xf32>, vector<12x8xf32> -> vector<12x24xf32>
    %cst_18 = arith.constant 0.000000e+00 : f32
    %43 = vector.broadcast %cst_18 : f32 to vector<12x104xf32>
    %44 = tpu.concatenate %42, %43 in 1 : vector<12x24xf32>, vector<12x104xf32> -> vector<12x128xf32>
    %c0_19 = arith.constant 0 : index
    %c0_20 = arith.constant 0 : index
    %45 = vector.load %arg5[%c0_19, %c0_20] : memref<12x128xf32, #tpu.memory_space<vmem>>, vector<12x128xf32>
    tpu.vector_store %arg5[%c0_19, %c0_20], %44 {strides = array<i32>} : memref<12x128xf32, #tpu.memory_space<vmem>>, vector<12x128xf32>,
    return
  }
}

</mosaic_0001>

<bundles_post_ra>
// kernel: tpu_custom_call.1
= control target key start
LH: loop header
LB: loop body
LE: loop exit
PB: predicated region body
PF: predicated region fallthrough
CT: control target
= control target key end

     0   :  { %vm492_vm0 = vcmask 1046528   ;;  %vm601_vm1 = vcmask 1045504   ;;  %s3030_s26 = smov 8   ;;  %s3031_s6 = smov 16   ;;  %s4039_s0 = inlined_call_operand.vmem [shape: f32[12,12,8], index: 0, kind: input, shape index: {}]   ;;  %s4040_s1 = inlined_call_operand.vmem [shape: f32[8,8], index: 1, kind: input, shape index: {}]   ;;  %s4041_s2 = inlined_call_operand.vmem [shape: f32[24,8], index: 2, kind: input, shape index: {}]   ;;  %s4042_s3 = inlined_call_operand.vmem [shape: f32[40,8], index: 3, kind: input, shape index: {}]   ;;  %s4043_s4 = inlined_call_operand.vmem [shape: f32[1,24], index: 4, kind: input, shape index: {}]   ;;  %s4044_s5 = inlined_call_operand.hbm [shape: f32[12,128], index: 5, kind: output, shape index: {}]  }
   0x1   :  { %v3075_v0 = vld [vmem:[%s4039_s0 + $0x10] sm:$0xff]  ;;  %v3080_v1 = vld [vmem:[%s4039_s0 + $0x18] sm:$0xf]  ;;  %v3085_v2 = vld [vmem:[%s4039_s0] sm:$0xff] }
   0x2   :  { %v496_v3 = vrot.slane %v3075_v0, 1  ;;  %v497_v4 = vrot.slane %v3080_v1, 1  ;;  %v3092_v5 = vld [vmem:[%s4039_s0 + $0x8] sm:$0xf]  ;;  %v493_v6 = vrot.slane %v3085_v2, 1  ;;  %v605_v8 = vrot.slane %v3075_v0, 2 }
   0x3   :  { %v494_v7 = vrot.slane %v3092_v5, 1  ;;  %v606_v9 = vrot.slane %v3080_v1, 2  ;;  %v602_v10 = vrot.slane %v3085_v2, 2  ;;  %v603_v12 = vrot.slane %v3092_v5, 2  ;;  %v3109_v16 = vld [vmem:[%s4039_s0 + $0x20] sm:$0xff] }
   0x4   :  { %v498_v11 = vsel %vm492_vm0, %v496_v3, %v497_v4  ;;  %v3114_v17 = vld [vmem:[%s4039_s0 + $0x28] sm:$0xf]  ;;  %v608_v18 = vrot.slane %v3109_v16, 2  ;;  %v499_v20 = vrot.slane %v3109_v16, 1 }
   0x5   :  { %533 = vrot.lane.b32.xlu1 %v498_v11, %s3030_s26  ;;  %v495_v13 = vsel %vm492_vm0, %v493_v6, %v494_v7  ;;  %v607_v14 = vsel %vm601_vm1, %v605_v8, %v606_v9  ;;  %v604_v15 = vsel %vm601_vm1, %v602_v10, %v603_v12  ;;  %v609_v19 = vrot.slane %v3114_v17, 2 }
   0x6   :  { %529 = vrot.lane.b32.xlu0 %v495_v13, %s3030_s26  ;;  %v500_v21 = vrot.slane %v3114_v17, 1 }
   0x7   :  { %v610_v22 = vsel %vm601_vm1, %v608_v18, %v609_v19 }
   0x9   :  { %642 = vrot.lane.b32.xlu1 %v607_v14, %s3031_s6 }
   0xa   :  { %638 = vrot.lane.b32.xlu0 %v604_v15, %s3031_s6 }
   0xd   :  { %640 = vrot.lane.b32.xlu1 %v603_v12, %s3031_s6 }
   0xe   :  { %531 = vrot.lane.b32.xlu0 %v494_v7, %s3030_s26 }
   0xf   :  { %10 = vsyncpa [#allocation3], 0  ;;  %v501_v23 = vsel %vm492_vm0, %v499_v20, %v500_v21  ;;  %v3129_v24 = vld [vmem:[%s4039_s0 + $0x30] sm:$0xff]  ;;  %v3134_v25 = vld [vmem:[%s4039_s0 + $0x38] sm:$0xf]  ;;  %v3032_v46 = vmov 0.0|0.0   ;;  %v70_v3 = vcombine.high %v3085_v2, %v3085_v2  ;;  %v71_v10 = vcombine.high %v3075_v0, %v3075_v0 }
  0x10   :  { %v502_v26 = vrot.slane %v3129_v24, 1  ;;  %v503_v27 = vrot.slane %v3134_v25, 1  ;;  %v611_v29 = vrot.slane %v3129_v24, 2  ;;  %v612_v30 = vrot.slane %v3134_v25, 2  ;;  %v3148_v31 = vld [vmem:[%s4039_s0 + $0x40] sm:$0xff]  ;;  %v3168_v39 = vld [vmem:[%s4039_s0 + $0x50] sm:$0xff]  ;;  %2965 = vmatprep.subr.bf16.mxu1 %v3032_v46 }
  0x11   :  { %646 = vrot.lane.b32.xlu1 %v610_v22, %s3031_s6  ;;  %v3153_v32 = vld [vmem:[%s4039_s0 + $0x48] sm:$0xf]  ;;  %v505_v34 = vrot.slane %v3148_v31, 1  ;;  %v614_v37 = vrot.slane %v3148_v31, 2  ;;  %v3173_v40 = vld [vmem:[%s4039_s0 + $0x58] sm:$0xf]  ;;  %v89_v8 = vcombine.low %v3085_v2, %v70_v3  ;;  %v72_v14 = vcombine.high %v3109_v16, %v3109_v16 }
  0x12   :  { %537 = vrot.lane.b32.xlu0 %v501_v23, %s3030_s26  ;;  %v504_v28 = vsel %vm492_vm0, %v502_v26, %v503_v27  ;;  %v613_v33 = vsel %vm601_vm1, %v611_v29, %v612_v30  ;;  %v506_v35 = vrot.slane %v3153_v32, 1  ;;  %v615_v38 = vrot.slane %v3153_v32, 2  ;;  %v1071_v41 = vld [vmem:[%s4041_s2] sm:$0xff]  ;;  %v1072_v42 = vld [vmem:[%s4041_s2 + $0x8] sm:$0xff]  ;;  %v1073_v51 = vld [vmem:[%s4041_s2 + $0x10] sm:$0xff]  ;;  %s3038_s13 = smov 112  }
  0x13   :  { %v617_v44 = vrot.slane %v3168_v39, 2  ;;  %v618_v45 = vrot.slane %v3173_v40, 2  ;;  %v2966_v47 = vpack.c.bf16 %v1072_v42, %v1071_v41  ;;  %v508_v48 = vrot.slane %v3168_v39, 1  ;;  %v3201_v54 = vld [vmem:[%s4039_s0 + $0x60] sm:$0xff]  ;;  %v3206_v55 = vld [vmem:[%s4039_s0 + $0x68] sm:$0xf] }
  0x14   :  { %v507_v36 = vsel %vm492_vm0, %v505_v34, %v506_v35  ;;  %v616_v43 = vsel %vm601_vm1, %v614_v37, %v615_v38  ;;  %v509_v49 = vrot.slane %v3173_v40, 1  ;;  %v3033_v50 = vmov 0.0   ;;  %v3221_v62 = vld [vmem:[%s4039_s0 + $0x70] sm:$0xff]  ;;  %v3226_v63 = vld [vmem:[%s4039_s0 + $0x78] sm:$0xf]  ;;  %v82_v7 = vld [vmem:[%s4040_s1] sm:$0xff] }
  0x15   :  { %644 = vrot.lane.b32.xlu1 %v606_v9, %s3031_s6  ;;  %2967 = vmatpush3.bf16.msra.mxu1 %v2966_v47  ;;  %v619_v52 = vsel %vm601_vm1, %v617_v44, %v618_v45  ;;  %vm3034_vm2 = vmmov 0   ;;  %v620_v56 = vrot.slane %v3201_v54, 2  ;;  %v621_v57 = vrot.slane %v3206_v55, 2  ;;  %v3253_v15 = vld [vmem:[%s4039_s0 + $0x80] sm:$0xff]  ;;  %v3258_v18 = vld [vmem:[%s4039_s0 + $0x88] sm:$0xf] }
  0x16   :  { %535 = vrot.lane.b32.xlu0 %v497_v4, %s3030_s26  ;;  %2890 = vmatprep.subr.mxu1 %v3033_v50  ;;  %v510_v53 = vsel %vm492_vm0, %v508_v48, %v509_v49  ;;  %v511_v58 = vrot.slane %v3201_v54, 1  ;;  %v512_v59 = vrot.slane %v3206_v55, 1  ;;  %v514_v4 = vrot.slane %v3221_v62, 1  ;;  %s3035_s1 = smov 24   ;;  %s3039_s14 = smov 120  }
  0x17   :  { %2892 = vmatprep.mubr.msk.f32.mxu1 %vm3034_vm2, %v3033_v50  ;;  %v622_v60 = vsel %vm601_vm1, %v620_v56, %v621_v57  ;;  %v515_v6 = vrot.slane %v3226_v63, 1  ;;  %2857 = vmatprep.subr.mxu0 %v82_v7  ;;  %v90_v9 = vcombine.low %v3092_v5, %v3075_v0  ;;  %vm107_vm3 = vcmask 64512   ;;  %v3322_v56 = vld [vmem:[%s4039_s0 + $0xa0] sm:$0xff] }
  0x18   :  { %v513_v61 = vsel %vm492_vm0, %v511_v58, %v512_v59  ;;  %2858 = vmatpush3.msra.mxu0 %v82_v7  ;;  %v623_v12 = vrot.slane %v3221_v62, 2  ;;  %v624_v13 = vrot.slane %v3226_v63, 2  ;;  %2859 = vmatprep.mubr.msk.f32.mxu0 %vm107_vm3, %v89_v8  ;;  %v92_v20 = vcombine.low %v3109_v16, %v72_v14  ;;  %v3349_v8 = vld [vmem:[%s4039_s0 + $0xb0] sm:$0xff] }
  0x19   :  { %541 = vrot.lane.b32.xlu1 %v504_v28, %s3030_s26  ;;  %2891 = vmatpush3.msra.mxu1 %v1073_v51  ;;  %v516_v11 = vsel %vm492_vm0, %v514_v4, %v515_v6  ;;  %v517_v22 = vrot.slane %v3253_v15, 1  ;;  %v518_v23 = vrot.slane %v3258_v18, 1  ;;  %v73_v26 = vcombine.high %v3129_v24, %v3129_v24 }
  0x1a   :  { %539 = vrot.lane.b32.xlu0 %v500_v21, %s3030_s26  ;;  %2860 = vmatmul.mubr.msk.f32.vlgmr.msra.gmra.mrb[0].mxu0 %vm107_vm3, %v90_v9  ;;  %v625_v21 = vsel %vm601_vm1, %v623_v12, %v624_v13  ;;  %v74_v29 = vcombine.high %v3148_v31, %v3148_v31  ;;  %v627_v34 = vrot.slane %v3258_v18, 2  ;;  %v75_v41 = vcombine.high %v3168_v39, %v3168_v39  ;;  %v2380_v12 = vld [vmem:[%s4042_s3] sm:$0xff] }
  0x1b   :  { %v94_v28 = vcombine.low %v73_v26, %v3134_v25  ;;  %v99_v58 = vcombine.low %v3206_v55, %v3221_v62  ;;  %v523_v3 = vrot.slane %v3322_v56, 1  ;;  %vm2209_vm4 = vcmask 1044480  }
  0x1c   :  { %v95_v37 = vcombine.low %v3148_v31, %v74_v29  ;;  %v97_v48 = vcombine.low %v75_v41, %v3173_v40  ;;  %v2382_v29 = vld [vmem:[%s4042_s3 + $0x10] sm:$0xff]  ;;  %vm2282_vm5 = vcmask 1043456   ;;  %vm734_vm6 = vcmask 130048  }
  0x1d   :  { %650 = vrot.lane.b32.xlu1 %v613_v33, %s3031_s6  ;;  %v626_v33 = vrot.slane %v3253_v15, 2  ;;  %vm1332_vm7 = vcmask 195584   ;;  %vm2367_vm8 = vcmask 261120   ;;  %vm2388_vm9 = vcmask 326656  }
  0x1e   :  { %648 = vrot.lane.b32.xlu0 %v609_v19, %s3031_s6  ;;  %v91_v19 = vcombine.low %v71_v10, %v3080_v1  ;;  %vm384_vm10 = vcmask 60416   ;;  %vm2658_vm11 = vcmask 1041409   ;;  %vm2660_vm12 = vcmask 1042434  }
  0x1f   :  { %v628_v42 = vsel %vm601_vm1, %v626_v33, %v627_v34  ;;  %v81_v33 = vcombine.high %v3349_v8, %v3349_v8  ;;  %vm2662_vm13 = vcmask 1043459   ;;  %vm2664_vm14 = vcmask 1044484  }
  0x20   :  { %2862 = vmatprep.mubr.msk.f32.mxu0 %vm107_vm3, %v91_v19  ;;  %vm2666_vm15 = vcmask 1045509  }
  0x21   :  { %545 = vrot.lane.b32.xlu1 %v507_v36, %s3030_s26  ;;  %2863 = vmatmul.mubr.msk.f32.gmra.mrb[2].mxu0 %vm107_vm3, %v92_v20  ;;  %v3291_v36 = vld [vmem:[%s4039_s0 + $0x98] sm:$0xf] }
  0x22   :  { %543 = vrot.lane.b32.xlu0 %v503_v27, %s3030_s26  ;;  %v93_v27 = vcombine.low %v3114_v17, %v3129_v24  ;;  %v630_v44 = vrot.slane %v3291_v36, 2  ;;  %v521_v47 = vrot.slane %v3291_v36, 1 }
  0x24   :  { %2865 = vmatprep.mubr.msk.f32.mxu0 %vm107_vm3, %v93_v27 }
  0x25   :  { %654 = vrot.lane.b32.xlu1 %v616_v43, %s3031_s6  ;;  %2866 = vmatmul.mubr.msk.f32.gmra.mrb[4].mxu0 %vm107_vm3, %v94_v28  ;;  %v635_v28 = vrot.slane %v3349_v8, 2 }
  0x26   :  { %652 = vrot.lane.b32.xlu0 %v612_v30, %s3031_s6  ;;  %v519_v30 = vsel %vm492_vm0, %v517_v22, %v518_v23  ;;  %2868 = vmatprep.mubr.msk.f32.mxu0 %vm107_vm3, %v95_v37  ;;  %v526_v22 = vrot.slane %v3349_v8, 1 }
  0x29   :  { %658 = vrot.lane.b32.xlu1 %v619_v52, %s3031_s6  ;;  %v77_v52 = vcombine.high %v3221_v62, %v3221_v62 }
  0x2a   :  { %549 = vrot.lane.b32.xlu0 %v510_v53, %s3030_s26 }
  0x2d   :  { %656 = vrot.lane.b32.xlu1 %v615_v38, %s3031_s6  ;;  %v96_v38 = vcombine.low %v3153_v32, %v3168_v39 }
  0x2e   :  { %547 = vrot.lane.b32.xlu0 %v506_v35, %s3030_s26  ;;  %v3286_v35 = vld [vmem:[%s4039_s0 + $0x90] sm:$0xff] }
  0x2f   :  { %v629_v43 = vrot.slane %v3286_v35, 2  ;;  %v520_v46 = vrot.slane %v3286_v35, 1  ;;  %2869 = vmatmul.mubr.msk.f32.gmra.mrb[6].mxu0 %vm107_vm3, %v96_v38  ;;  %v102_v14 = vcombine.low %v3258_v18, %v3286_v35  ;;  %v79_v20 = vcombine.high %v3286_v35, %v3286_v35 }
  0x30   :  { %2871 = vmatprep.mubr.msk.f32.mxu0 %vm107_vm3, %v97_v48  ;;  %v2384_v48 = vld [vmem:[%s4042_s3 + $0x20] sm:$0xff] }
  0x31   :  { %662 = vrot.lane.b32.xlu1 %v622_v60, %s3031_s6  ;;  %v631_v51 = vsel %vm601_vm1, %v629_v43, %v630_v44  ;;  %v522_v53 = vsel %vm492_vm0, %v520_v46, %v521_v47  ;;  %v632_v60 = vrot.slane %v3322_v56, 2  ;;  %v103_v26 = vcombine.low %v79_v20, %v3291_v36 }
  0x32   :  { %553 = vrot.lane.b32.xlu0 %v513_v61, %s3030_s26  ;;  %v2210_v46 = vrot.slane %v3085_v2, 3 }
  0x35   :  { %660 = vrot.lane.b32.xlu1 %v618_v45, %s3031_s6  ;;  %v76_v45 = vcombine.high %v3201_v54, %v3201_v54 }
  0x36   :  { %551 = vrot.lane.b32.xlu0 %v509_v49, %s3030_s26 }
  0x37   :  { %v98_v49 = vcombine.low %v3201_v54, %v76_v45  ;;  %v2214_v45 = vrot.slane %v3080_v1, 3 }
  0x39   :  { %557 = vrot.lane.b32.xlu1 %v516_v11, %s3030_s26  ;;  %2872 = vmatmul.mubr.msk.f32.gmra.mrb[8].mxu0 %vm107_vm3, %v98_v49  ;;  %v3356_v11 = vld [vmem:[%s4039_s0 + $0xb8] sm:$0xf] }
  0x3a   :  { %555 = vrot.lane.b32.xlu0 %v512_v59, %s3030_s26  ;;  %v100_v59 = vcombine.low %v77_v52, %v3226_v63  ;;  %2874 = vmatprep.mubr.msk.f32.mxu0 %vm107_vm3, %v99_v58  ;;  %v636_v37 = vrot.slane %v3356_v11, 2  ;;  %v2283_v52 = vrot.slane %v3085_v2, 4 }
  0x3c   :  { %v637_v43 = vsel %vm601_vm1, %v635_v28, %v636_v37  ;;  %v2298_v28 = vrot.slane %v3168_v39, 4 }
  0x3d   :  { %666 = vrot.lane.b32.xlu1 %v625_v21, %s3031_s6  ;;  %2875 = vmatmul.mubr.msk.f32.gmra.mrb[10].mxu0 %vm107_vm3, %v100_v59  ;;  %v80_v21 = vcombine.high %v3322_v56, %v3322_v56  ;;  %v2286_v59 = vrot.slane %v3075_v0, 4 }
  0x3e   :  { %664 = vrot.lane.b32.xlu0 %v621_v57, %s3031_s6  ;;  %v3327_v57 = vld [vmem:[%s4039_s0 + $0xa8] sm:$0xf] }
  0x3f   :  { %v633_v61 = vrot.slane %v3327_v57, 2  ;;  %v524_v4 = vrot.slane %v3327_v57, 1  ;;  %v104_v27 = vcombine.low %v3322_v56, %v80_v21  ;;  %v105_v38 = vcombine.low %v3327_v57, %v3349_v8 }
  0x40   :  { %v2225_v21 = vrot.slane %v3168_v39, 3 }
  0x41   :  { %561 = vrot.lane.b32.xlu1 %v519_v30, %s3030_s26  ;;  %v634_v7 = vsel %vm601_vm1, %v632_v60, %v633_v61  ;;  %v525_v10 = vsel %vm492_vm0, %v523_v3, %v524_v4  ;;  %v2383_v30 = vld [vmem:[%s4042_s3 + $0x18] sm:$0xff]  ;;  %v2287_v60 = vrot.slane %v3080_v1, 4  ;;  %v2220_v3 = vrot.slane %v3134_v25, 3 }
  0x42   :  { %559 = vrot.lane.b32.xlu0 %v515_v6, %s3030_s26  ;;  %v78_v6 = vcombine.high %v3253_v15, %v3253_v15  ;;  %v2972_v41 = vpack.c.bf16 %v2383_v30, %v2382_v29  ;;  %v2299_v29 = vrot.slane %v3173_v40, 4  ;;  %vm2670_vm1 = vcmask 1047559  }
  0x44   :  { %v101_v9 = vcombine.low %v3253_v15, %v78_v6  ;;  %v2216_v6 = vrot.slane %v3109_v16, 3 }
  0x45   :  { %670 = vrot.lane.b32.xlu1 %v628_v42, %s3031_s6  ;;  %v106_v42 = vcombine.low %v81_v33, %v3356_v11  ;;  %v3037_v33 = vmov 1983009808  }
  0x46   :  { %668 = vrot.lane.b32.xlu0 %v624_v13, %s3031_s6  ;;  %v2381_v13 = vld [vmem:[%s4042_s3 + $0x8] sm:$0xff]  ;;  %2877 = vmatprep.mubr.msk.f32.mxu0 %vm107_vm3, %v101_v9  ;;  %s3036_s3 = smov 32  }
  0x47   :  { %v2968_v19 = vpack.c.bf16 %v2381_v13, %v2380_v12  ;;  %2878 = vmatmul.mubr.msk.f32.gmra.mrb[12].mxu0 %vm107_vm3, %v102_v14  ;;  %v2293_v12 = vrot.slane %v3134_v25, 4  ;;  %v2289_v14 = vrot.slane %v3109_v16, 4 }
  0x48   :  { %2880 = vmatprep.mubr.msk.f32.mxu0 %vm107_vm3, %v103_v26  ;;  %v2222_v26 = vrot.slane %v3148_v31, 3 }
  0x49   :  { %674 = vrot.lane.b32.xlu1 %v631_v51, %s3031_s6  ;;  %2969 = vmatprep.subr.bf16.mxu0 %v2968_v19 }
  0x4a   :  { %565 = vrot.lane.b32.xlu0 %v522_v53, %s3030_s26  ;;  %2971 = vmatpush3.bf16.msra.mxu0 %v2968_v19  ;;  %v2284_v53 = vrot.slane %v3092_v5, 4  ;;  %v2290_v19 = vrot.slane %v3114_v17, 4 }
  0x4b   :  { %2881 = vmatmul.mubr.msk.f32.gmra.mrb[14].mxu0 %vm107_vm3, %v104_v27  ;;  %2973 = vmatprep.subr.bf16.mxu0 %v2972_v41  ;;  %v2223_v27 = vrot.slane %v3153_v32, 3 }
  0x4c   :  { %2883 = vmatprep.mubr.msk.f32.mxu0 %vm107_vm3, %v105_v38  ;;  %v2285_v58 = vsel %vm2282_vm5, %v2283_v52, %v2284_v53  ;;  %v2229_v52 = vrot.slane %v3206_v55, 3 }
  0x4d   :  { %672 = vrot.lane.b32.xlu1 %v627_v34, %s3031_s6  ;;  %v2224_v38 = vsel %vm2209_vm4, %v2222_v26, %v2223_v27 }
  0x4e   :  { %563 = vrot.lane.b32.xlu0 %v518_v23, %s3030_s26  ;;  %v527_v23 = vrot.slane %v3356_v11, 1  ;;  %2975 = vmatpush3.bf16.msra.mxu0 %v2972_v41  ;;  %v2295_v41 = vrot.slane %v3148_v31, 4 }
  0x4f   :  { %2884 = vmatmul.mubr.msk.f32.gmra.mrb[16].mxu0 %vm107_vm3, %v106_v42  ;;  %2945 = vmatprep.subr.mxu0 %v2384_v48  ;;  %v2296_v42 = vrot.slane %v3153_v32, 4 }
  0x50   :  { %v528_v34 = vsel %vm492_vm0, %v526_v22, %v527_v23  ;;  %v2226_v22 = vrot.slane %v3173_v40, 3  ;;  %vm2668_vm0 = vcmask 1046534  }
  0x51   :  { %678 = vrot.lane.b32.xlu1 %v634_v7, %s3031_s6  ;;  %v2217_v7 = vrot.slane %v3114_v17, 3 }
  0x52   :  { %569 = vrot.lane.b32.xlu0 %v525_v10, %s3030_s26  ;;  %2946 = vmatpush3.msra.mxu0 %v2384_v48  ;;  %v2292_v10 = vrot.slane %v3129_v24, 4  ;;  %v2227_v30 = vsel %vm2209_vm4, %v2225_v21, %v2226_v22 }
  0x53   :  { %v2218_v13 = vsel %vm2209_vm4, %v2216_v6, %v2217_v7  ;;  %v2301_v7 = vrot.slane %v3201_v54, 4 }
  0x54   :  { %v2294_v20 = vsel %vm2282_vm5, %v2292_v10, %v2293_v12 }
  0x55   :  { %676 = vrot.lane.b32.xlu1 %v630_v44, %s3031_s6  ;;  %v2213_v44 = vrot.slane %v3075_v0, 3 }
  0x56   :  { %567 = vrot.lane.b32.xlu0 %v521_v47, %s3030_s26  ;;  %v2211_v47 = vrot.slane %v3092_v5, 3 }
  0x57   :  { %v2215_v49 = vsel %vm2209_vm4, %v2213_v44, %v2214_v45 }
  0x58   :  { %v2212_v51 = vsel %vm2209_vm4, %v2210_v46, %v2211_v47  ;;  %v2231_v46 = vrot.slane %v3221_v62, 3  ;;  %v2232_v47 = vrot.slane %v3226_v63, 3 }
  0x59   :  { %573 = vrot.lane.b32.xlu1 %v528_v34, %s3030_s26  ;;  %v785_v34 = vunpack.c.l.s4 %v3037_v33 }
  0x5a   :  { %571 = vrot.lane.b32.xlu0 %v524_v4, %s3030_s26  ;;  %v2288_v4 = vsel %vm2282_vm5, %v2286_v59, %v2287_v60  ;;  %v2233_v59 = vsel %vm2209_vm4, %v2231_v46, %v2232_v47  ;;  %v2304_v60 = vrot.slane %v3221_v62, 4 }
  0x5b   :  { %v786_v44 = vunpack.c.0.s8 %v785_v34 }
  0x5d   :  { %682 = vrot.lane.b32.xlu1 %v637_v43, %s3031_s6  ;;  %v2300_v43 = vsel %vm2282_vm5, %v2298_v28, %v2299_v29  ;;  %v2234_v28 = vrot.slane %v3253_v15, 3  ;;  %v2235_v29 = vrot.slane %v3258_v18, 3 }
  0x5e   :  { %680 = vrot.lane.b32.xlu0 %v633_v61, %s3031_s6  ;;  %v2219_v61 = vrot.slane %v3129_v24, 3 }
  0x60   :  { %v2221_v9 = vsel %vm2209_vm4, %v2219_v61, %v2220_v3  ;;  %v2305_v61 = vrot.slane %v3226_v63, 4 }
  0x61   :  { %2248 = vrot.lane.b32.xlu1 %v2215_v49, %s3035_s1  ;;  %v2297_v49 = vsel %vm2282_vm5, %v2295_v41, %v2296_v42  ;;  %v2311_v41 = vrot.slane %v3291_v36, 4 }
  0x62   :  { %2246 = vrot.lane.b32.xlu0 %v2212_v51, %s3035_s1  ;;  %v2228_v51 = vrot.slane %v3201_v54, 3 }
  0x64   :  { %v2230_v6 = vsel %vm2209_vm4, %v2228_v51, %v2229_v52 }
  0x65   :  { %575 = vrot.lane.b32.xlu1 %v527_v23, %s3030_s26  ;;  %v2291_v23 = vsel %vm2282_vm5, %v2289_v14, %v2290_v19  ;;  %v2237_v14 = vrot.slane %v3286_v35, 3  ;;  %v2238_v19 = vrot.slane %v3291_v36, 3 }
  0x66   :  { %2319 = vrot.lane.b32.xlu0 %v2285_v58, %s3036_s3 }
  0x69   :  { %684 = vrot.lane.b32.xlu1 %v636_v37, %s3031_s6  ;;  %v787_v37 = vlaneseq }
  0x6a   :  { %2321 = vrot.lane.b32.xlu0 %v2288_v4, %s3036_s3 }
  0x6b   :  { %v788_v45 = vshrl.u32 %v787_v37, 7 }
  0x6d   :  { %2252 = vrot.lane.b32.xlu1 %v2221_v9, %s3035_s1  ;;  %v3460_v58 = vsub.s32 %v786_v44, %v788_v45  ;;  %v2302_v9 = vrot.slane %v3206_v55, 4  ;;  %v2307_v44 = vrot.slane %v3253_v15, 4  ;;  %v2308_v45 = vrot.slane %v3258_v18, 4 }
  0x6e   :  { %2250 = vrot.lane.b32.xlu0 %v2218_v13, %s3035_s1 }
  0x6f   :  { %v2303_v27 = vsel %vm2282_vm5, %v2301_v7, %v2302_v9  ;;  %v2309_v7 = vsel %vm2282_vm5, %v2307_v44, %v2308_v45 }
  0x71   :  { %2325 = vrot.lane.b32.xlu1 %v2294_v20, %s3036_s3 }
  0x72   :  { %2323 = vrot.lane.b32.xlu0 %v2291_v23, %s3036_s3  ;;  %v2306_v23 = vsel %vm2282_vm5, %v2304_v60, %v2305_v61  ;;  %v2243_v61 = vrot.slane %v3349_v8, 3 }
  0x75   :  { %2256 = vrot.lane.b32.xlu1 %v2227_v30, %s3035_s1  ;;  %v2310_v30 = vrot.slane %v3286_v35, 4 }
  0x76   :  { %2254 = vrot.lane.b32.xlu0 %v2224_v38, %s3035_s1  ;;  %v2239_v38 = vsel %vm2209_vm4, %v2237_v14, %v2238_v19 }
  0x77   :  { %v534_v48 = vpop.permute.xlu1 %533  ;;  %v2312_v60 = vsel %vm2282_vm5, %v2310_v30, %v2311_v41 }
  0x78   :  { %v530_v53 = vpop.permute.xlu0 %529  ;;  %v712_v3 = vsel %vm107_vm3, %v3075_v0, %v534_v48 }
  0x79   :  { %2329 = vrot.lane.b32.xlu1 %v2300_v43, %s3036_s3  ;;  %v710_v10 = vsel %vm107_vm3, %v3085_v2, %v530_v53  ;;  %v2236_v53 = vsel %vm2209_vm4, %v2234_v28, %v2235_v29  ;;  %v2316_v28 = vrot.slane %v3349_v8, 4 }
  0x7a   :  { %2327 = vrot.lane.b32.xlu0 %v2297_v49, %s3036_s3 }
  0x7b   :  { %v643_v4 = vpop.permute.xlu1 %642 }
  0x7c   :  { %v3473_v12 = vsel %vm734_vm6, %v712_v3, %v643_v4  ;;  %v639_v13 = vpop.permute.xlu0 %638  ;;  %v2244_v3 = vrot.slane %v3356_v11, 3 }
  0x7d   :  { %v807_v0 = vcombine.high %v3473_v12, %v3473_v12  ;;  %v3480_v20 = vsel %vm734_vm6, %v710_v10, %v639_v13  ;;  %2260 = vrot.lane.b32.xlu1 %v2233_v59, %s3035_s1  ;;  %v814_v21 = vrot.slane %v3473_v12, %v3460_v58 }
  0x7e   :  { %v783_v2 = vcombine.high %v3480_v20, %v3480_v20  ;;  %v790_v22 = vrot.slane %v3480_v20, %v3460_v58  ;;  %2258 = vrot.lane.b32.xlu0 %v2230_v6, %s3035_s1 }
  0x7f   :  { %v641_v26 = vpop.permute.xlu1 %640  ;;  %v821_v42 = vrot.slane %v807_v0, %v3460_v58  ;;  %v822_v46 = vcombine.high %v814_v21, %v814_v21 }
  0x80   :  { %v797_v33 = vrot.slane %v783_v2, %v3460_v58  ;;  %v798_v34 = vcombine.high %v790_v22, %v790_v22  ;;  %v532_v37 = vpop.permute.xlu0 %531  ;;  %v2241_v2 = vrot.slane %v3327_v57, 3 }
  0x81   :  { %v711_v43 = vsel %vm107_vm3, %v3092_v5, %v532_v37  ;;  %2333 = vrot.lane.b32.xlu1 %v2306_v23, %s3036_s3  ;;  %v1092_v9 = vcombine.low %v822_v46, %v821_v42  ;;  %v823_v44 = vcombine.high %v821_v42, %v821_v42 }
  0x82   :  { %v799_v47 = vcombine.high %v797_v33, %v797_v33  ;;  %v1074_v48 = vcombine.low %v790_v22, %v798_v34  ;;  %v736_v49 = vsel %vm734_vm6, %v711_v43, %v641_v26  ;;  %2331 = vrot.lane.b32.xlu0 %v2303_v27, %s3036_s3  ;;  %v2245_v27 = vsel %vm2209_vm4, %v2243_v61, %v2244_v3 }
  0x83   :  { %v806_v51 = vrot.slane %v736_v49, %v3460_v58  ;;  %v647_v52 = vpop.permute.xlu1 %646  ;;  %v2313_v34 = vrot.slane %v3322_v56, 4  ;;  %v1106_v41 = vrot.slane %v1092_v9, %v3460_v58  ;;  %v2314_v43 = vrot.slane %v3327_v57, 4 }
  0x84   :  { %v1075_v59 = vcombine.low %v797_v33, %v799_v47  ;;  %v538_v5 = vpop.permute.xlu0 %537  ;;  %v1082_v10 = vrot.slane %v1074_v48, %v3460_v58  ;;  %v2317_v33 = vrot.slane %v3356_v11, 4 }
  0x85   :  { %v1091_v4 = vcombine.low %v806_v51, %v814_v21  ;;  %v714_v6 = vsel %vm107_vm3, %v3109_v16, %v538_v5  ;;  %2264 = vrot.lane.b32.xlu1 %v2239_v38, %s3035_s1  ;;  %v2240_v21 = vrot.slane %v3322_v56, 3 }
  0x86   :  { %v3517_v13 = vsel %vm734_vm6, %v714_v6, %v647_v52  ;;  %2262 = vrot.lane.b32.xlu0 %v2236_v53, %s3035_s1  ;;  %v1089_v14 = vrot.slane %v1075_v59, %v3460_v58  ;;  %v2318_v42 = vsel %vm2282_vm5, %v2316_v28, %v2317_v33 }
  0x87   :  { %v831_v19 = vcombine.high %v3517_v13, %v3517_v13  ;;  %v838_v16 = vrot.slane %v3517_v13, %v3460_v58  ;;  %v645_v0 = vpop.permute.xlu1 %644  ;;  %v1099_v22 = vrot.slane %v1091_v4, %v3460_v58  ;;  %v2242_v47 = vsel %vm2209_vm4, %v2240_v21, %v2241_v2 }
  0x88   :  { %v536_v23 = vpop.permute.xlu0 %535  ;;  %v1090_v26 = vcombine.low %v1082_v10, %v1089_v14 }
  0x89   :  { %v846_v29 = vcombine.high %v838_v16, %v838_v16  ;;  %v713_v30 = vsel %vm107_vm3, %v3080_v1, %v536_v23  ;;  %2337 = vrot.lane.b32.xlu1 %v2312_v60, %s3036_s3  ;;  %v845_v37 = vrot.slane %v831_v19, %v3460_v58  ;;  %v1107_v49 = vcombine.low %v1099_v22, %v1106_v41 }
  0x8a   :  { %v738_v38 = vsel %vm734_vm6, %v713_v30, %v645_v0  ;;  %2335 = vrot.lane.b32.xlu0 %v2309_v7, %s3036_s3  ;;  %2893 = vmatmul.mubr.msk.f32.vlgmr.msra.gmra.mrb[0].mxu1 %vm1332_vm7, %v1090_v26  ;;  %v2315_v60 = vsel %vm2282_vm5, %v2313_v34, %v2314_v43 }
  0x8b   :  { %v1109_v1 = vcombine.low %v838_v16, %v846_v29  ;;  %v830_v45 = vrot.slane %v738_v38, %v3460_v58  ;;  %v542_v46 = vpop.permute.xlu1 %541  ;;  %2895 = vmatprep.mubr.msk.f32.mxu1 %vm3034_vm2, %v3033_v50  ;;  %v847_v52 = vcombine.high %v845_v37, %v845_v37  ;;  %v3573_v16 = vld [vmem:[%s4043_s4] ss:$0 sm:$0xff]  ;;  %s3040_s4 = smov [#allocation2]  }
  0x8c   :  { %v540_v48 = vpop.permute.xlu0 %539  ;;  %v716_v59 = vsel %vm107_vm3, %v3129_v24, %v542_v46  ;;  %s2746_s15 = sshll.u32 %s3040_s4, 4  ;;  %s2747_s15 = int_to_ptr.vmem [resolvable:$true] %s2746_s15 }
  0x8d   :  { %v1108_v51 = vcombine.low %v823_v44, %v830_v45  ;;  %2268 = vrot.lane.b32.xlu1 %v2245_v27, %s3035_s1  ;;  %v1123_v61 = vrot.slane %v1109_v1, %v3460_v58  ;;  %v715_v3 = vsel %vm107_vm3, %v3114_v17, %v540_v48  ;;  %v1125_v10 = vcombine.low %v845_v37, %v847_v52  ;;  %p3011_p1 = scmp.lt.s32.totalorder %s2747_s15, %s2747_s15 }
  0x8e   :  { %2266 = vrot.lane.b32.xlu0 %v2242_v47, %s3035_s1  ;;  %2896 = vmatmul.mubr.msk.f32.gmra.mrb[2].mxu1 %vm1332_vm7, %v1107_v49 }
  0x8f   :  { %v1116_v53 = vrot.slane %v1108_v51, %v3460_v58  ;;  %v651_v5 = vpop.permute.xlu1 %650  ;;  %2898 = vmatprep.mubr.msk.f32.mxu1 %vm3034_vm2, %v3033_v50  ;;  %v1133_v26 = vrot.slane %v1125_v10, %v3460_v58 }
  0x90   :  { %v3559_v4 = vsel %vm734_vm6, %v716_v59, %v651_v5  ;;  %v649_v6 = vpop.permute.xlu0 %648 }
  0x91   :  { %v862_v7 = vrot.slane %v3559_v4, %v3460_v58  ;;  %v740_v24 = vsel %vm734_vm6, %v715_v3, %v649_v6  ;;  %2341 = vrot.lane.b32.xlu1 %v2318_v42, %s3036_s3  ;;  %v1124_v9 = vcombine.low %v1116_v53, %v1123_v61  ;;  %v855_v14 = vcombine.high %v3559_v4, %v3559_v4 }
  0x92   :  { %v854_v19 = vrot.slane %v740_v24, %v3460_v58  ;;  %2339 = vrot.lane.b32.xlu0 %v2315_v60, %s3036_s3 }
  0x93   :  { %2899 = vmatmul.mubr.msk.f32.gmra.mrb[4].mxu1 %vm1332_vm7, %v1124_v9  ;;  %v546_v17 = vpop.permute.xlu1 %545  ;;  %v869_v2 = vrot.slane %v855_v14, %v3460_v58  ;;  %v870_v22 = vcombine.high %v862_v7, %v862_v7 }
  0x94   :  { %v1126_v0 = vcombine.low %v854_v19, %v862_v7  ;;  %v544_v21 = vpop.permute.xlu0 %543  ;;  %2901 = vmatprep.mubr.msk.f32.mxu1 %vm3034_vm2, %v3033_v50  ;;  %v718_v27 = vsel %vm107_vm3, %v3148_v31, %v546_v17 }
  0x95   :  { %2385 = vrot.lane.b32.xlu1 %v3573_v16, %s3038_s13  ;;  %v717_v29 = vsel %vm107_vm3, %v3134_v25, %v544_v21  ;;  %v1142_v43 = vcombine.low %v870_v22, %v869_v2  ;;  %v871_v44 = vcombine.high %v869_v2, %v869_v2 }
  0x96   :  { %v1140_v23 = vrot.slane %v1126_v0, %v3460_v58  ;;  %1329 = vrot.lane.b32.xlu0 %v3573_v16, %s3039_s14 }
  0x97   :  { %v655_v28 = vpop.permute.xlu1 %654  ;;  %v1150_v53 = vrot.slane %v1142_v43, %v3460_v58 }
  0x98   :  { %v3587_v30 = vsel %vm734_vm6, %v718_v27, %v655_v28  ;;  %v653_v33 = vpop.permute.xlu0 %652  ;;  %v1141_v34 = vcombine.low %v1133_v26, %v1140_v23 }
  0x99   :  { %v879_v37 = vcombine.high %v3587_v30, %v3587_v30  ;;  %v886_v38 = vrot.slane %v3587_v30, %v3460_v58  ;;  %v742_v41 = vsel %vm734_vm6, %v717_v29, %v653_v33 }
  0x9a   :  { %v878_v31 = vrot.slane %v742_v41, %v3460_v58  ;;  %2902 = vmatmul.mubr.msk.f32.gmra.mrb[6].mxu1 %vm1332_vm7, %v1141_v34 }
  0x9b   :  { %v893_v25 = vrot.slane %v879_v37, %v3460_v58  ;;  %v894_v1 = vcombine.high %v886_v38, %v886_v38  ;;  %v659_v45 = vpop.permute.xlu1 %658  ;;  %2904 = vmatprep.mubr.msk.f32.mxu1 %vm3034_vm2, %v3033_v50 }
  0x9c   :  { %v1143_v46 = vcombine.low %v871_v44, %v878_v31  ;;  %v550_v47 = vpop.permute.xlu0 %549 }
  0x9d   :  { %v895_v48 = vcombine.high %v893_v25, %v893_v25  ;;  %v1159_v49 = vcombine.low %v886_v38, %v894_v1  ;;  %v720_v51 = vsel %vm107_vm3, %v3168_v39, %v550_v47 }
  0x9e   :  { %v1157_v52 = vrot.slane %v1143_v46, %v3460_v58  ;;  %v3603_v42 = vsel %vm734_vm6, %v720_v51, %v659_v45 }
  0x9f   :  { %v1160_v59 = vcombine.low %v893_v25, %v895_v48  ;;  %v903_v5 = vcombine.high %v3603_v42, %v3603_v42  ;;  %v910_v60 = vrot.slane %v3603_v42, %v3460_v58  ;;  %v657_v61 = vpop.permute.xlu1 %656  ;;  %v1167_v3 = vrot.slane %v1159_v49, %v3460_v58 }
  0xa0   :  { %v548_v6 = vpop.permute.xlu0 %547  ;;  %v1158_v7 = vcombine.low %v1150_v53, %v1157_v52 }
  0xa1   :  { %v917_v39 = vrot.slane %v903_v5, %v3460_v58  ;;  %v918_v24 = vcombine.high %v910_v60, %v910_v60  ;;  %v719_v9 = vsel %vm107_vm3, %v3153_v32, %v548_v6  ;;  %v1174_v10 = vrot.slane %v1160_v59, %v3460_v58 }
  0xa2   :  { %v744_v14 = vsel %vm734_vm6, %v719_v9, %v657_v61  ;;  %2905 = vmatmul.mubr.msk.f32.gmra.mrb[8].mxu1 %vm1332_vm7, %v1158_v7 }
  0xa3   :  { %v1177_v19 = vcombine.low %v918_v24, %v917_v39  ;;  %v902_v17 = vrot.slane %v744_v14, %v3460_v58  ;;  %v663_v0 = vpop.permute.xlu1 %662  ;;  %2907 = vmatprep.mubr.msk.f32.mxu1 %vm3034_vm2, %v3033_v50  ;;  %v1175_v21 = vcombine.low %v1167_v3, %v1174_v10  ;;  %v919_v31 = vcombine.high %v917_v39, %v917_v39 }
  0xa4   :  { %v554_v2 = vpop.permute.xlu0 %553 }
  0xa5   :  { %v1176_v22 = vcombine.low %v902_v17, %v910_v60  ;;  %v722_v23 = vsel %vm107_vm3, %v3201_v54, %v554_v2  ;;  %v1191_v33 = vrot.slane %v1177_v19, %v3460_v58 }
  0xa6   :  { %v3623_v32 = vsel %vm734_vm6, %v722_v23, %v663_v0  ;;  %2908 = vmatmul.mubr.msk.f32.gmra.mrb[10].mxu1 %vm1332_vm7, %v1175_v21 }
  0xa7   :  { %v1184_v26 = vrot.slane %v1176_v22, %v3460_v58  ;;  %v927_v27 = vcombine.high %v3623_v32, %v3623_v32  ;;  %v934_v28 = vrot.slane %v3623_v32, %v3460_v58  ;;  %v661_v29 = vpop.permute.xlu1 %660  ;;  %2910 = vmatprep.mubr.msk.f32.mxu1 %vm3034_vm2, %v3033_v50 }
  0xa8   :  { %v552_v54 = vpop.permute.xlu0 %551 }
  0xa9   :  { %v942_v34 = vcombine.high %v934_v28, %v934_v28  ;;  %v721_v37 = vsel %vm107_vm3, %v3173_v40, %v552_v54  ;;  %v1192_v38 = vcombine.low %v1184_v26, %v1191_v33  ;;  %v941_v41 = vrot.slane %v927_v27, %v3460_v58 }
  0xaa   :  { %v746_v43 = vsel %vm734_vm6, %v721_v37, %v661_v29 }
  0xab   :  { %v1194_v44 = vcombine.low %v934_v28, %v942_v34  ;;  %v926_v25 = vrot.slane %v746_v43, %v3460_v58  ;;  %2911 = vmatmul.mubr.msk.f32.gmra.mrb[12].mxu1 %vm1332_vm7, %v1192_v38  ;;  %v558_v1 = vpop.permute.xlu1 %557  ;;  %v943_v47 = vcombine.high %v941_v41, %v941_v41 }
  0xac   :  { %v556_v45 = vpop.permute.xlu0 %555  ;;  %2913 = vmatprep.mubr.msk.f32.mxu1 %vm3034_vm2, %v3033_v50  ;;  %v724_v48 = vsel %vm107_vm3, %v3221_v62, %v558_v1 }
  0xad   :  { %v1193_v46 = vcombine.low %v919_v31, %v926_v25  ;;  %v1208_v51 = vrot.slane %v1194_v44, %v3460_v58  ;;  %v723_v52 = vsel %vm107_vm3, %v3206_v55, %v556_v45  ;;  %v1210_v3 = vcombine.low %v941_v41, %v943_v47 }
  0xaf   :  { %v1201_v40 = vrot.slane %v1193_v46, %v3460_v58  ;;  %v667_v49 = vpop.permute.xlu1 %666  ;;  %v1218_v14 = vrot.slane %v1210_v3, %v3460_v58 }
  0xb0   :  { %v3649_v53 = vsel %vm734_vm6, %v724_v48, %v667_v49  ;;  %v665_v59 = vpop.permute.xlu0 %664 }
  0xb1   :  { %v958_v5 = vrot.slane %v3649_v53, %v3460_v58  ;;  %v748_v60 = vsel %vm734_vm6, %v723_v52, %v665_v59  ;;  %v1209_v61 = vcombine.low %v1201_v40, %v1208_v51  ;;  %v951_v62 = vcombine.high %v3649_v53, %v3649_v53 }
  0xb2   :  { %v950_v6 = vrot.slane %v748_v60, %v3460_v58 }
  0xb3   :  { %2914 = vmatmul.mubr.msk.f32.gmra.mrb[14].mxu1 %vm1332_vm7, %v1209_v61  ;;  %v562_v7 = vpop.permute.xlu1 %561  ;;  %v965_v24 = vrot.slane %v951_v62, %v3460_v58  ;;  %v966_v9 = vcombine.high %v958_v5, %v958_v5 }
  0xb4   :  { %v1211_v55 = vcombine.low %v950_v6, %v958_v5  ;;  %v560_v39 = vpop.permute.xlu0 %559  ;;  %2916 = vmatprep.mubr.msk.f32.mxu1 %vm3034_vm2, %v3033_v50  ;;  %v726_v19 = vsel %vm107_vm3, %v3253_v15, %v562_v7 }
  0xb5   :  { %v725_v0 = vsel %vm107_vm3, %v3226_v63, %v560_v39  ;;  %v1227_v28 = vcombine.low %v966_v9, %v965_v24  ;;  %v967_v29 = vcombine.high %v965_v24, %v965_v24 }
  0xb6   :  { %v1225_v10 = vrot.slane %v1211_v55, %v3460_v58 }
  0xb7   :  { %v671_v17 = vpop.permute.xlu1 %670  ;;  %v1235_v25 = vrot.slane %v1227_v28, %v3460_v58 }
  0xb8   :  { %v3668_v21 = vsel %vm734_vm6, %v726_v19, %v671_v17  ;;  %v669_v2 = vpop.permute.xlu0 %668  ;;  %v1226_v22 = vcombine.low %v1218_v14, %v1225_v10 }
  0xb9   :  { %v975_v23 = vcombine.high %v3668_v21, %v3668_v21  ;;  %v982_v26 = vrot.slane %v3668_v21, %v3460_v58  ;;  %v750_v27 = vsel %vm734_vm6, %v725_v0, %v669_v2 }
  0xba   :  { %v974_v15 = vrot.slane %v750_v27, %v3460_v58  ;;  %2917 = vmatmul.mubr.msk.f32.gmra.mrb[16].mxu1 %vm1332_vm7, %v1226_v22 }
  0xbb   :  { %v989_v63 = vrot.slane %v975_v23, %v3460_v58  ;;  %v990_v33 = vcombine.high %v982_v26, %v982_v26  ;;  %v675_v54 = vpop.permute.xlu1 %674  ;;  %2919 = vmatprep.mubr.msk.f32.mxu1 %vm3034_vm2, %v3033_v50 }
  0xbc   :  { %v1228_v34 = vcombine.low %v967_v29, %v974_v15  ;;  %v566_v37 = vpop.permute.xlu0 %565 }
  0xbd   :  { %v991_v38 = vcombine.high %v989_v63, %v989_v63  ;;  %v1244_v41 = vcombine.low %v982_v26, %v990_v33  ;;  %v728_v43 = vsel %vm107_vm3, %v3286_v35, %v566_v37 }
  0xbe   :  { %v1242_v44 = vrot.slane %v1228_v34, %v3460_v58  ;;  %v3684_v31 = vsel %vm734_vm6, %v728_v43, %v675_v54 }
  0xbf   :  { %v1245_v1 = vcombine.low %v989_v63, %v991_v38  ;;  %v999_v45 = vcombine.high %v3684_v31, %v3684_v31  ;;  %v1006_v46 = vrot.slane %v3684_v31, %v3460_v58  ;;  %v673_v47 = vpop.permute.xlu1 %672  ;;  %v1252_v40 = vrot.slane %v1244_v41, %v3460_v58 }
  0xc0   :  { %v564_v48 = vpop.permute.xlu0 %563  ;;  %v1243_v49 = vcombine.low %v1235_v25, %v1242_v44 }
  0xc1   :  { %v1013_v35 = vrot.slane %v999_v45, %v3460_v58  ;;  %v1014_v51 = vcombine.high %v1006_v46, %v1006_v46  ;;  %v727_v52 = vsel %vm107_vm3, %v3258_v18, %v564_v48  ;;  %v1259_v59 = vrot.slane %v1245_v1, %v3460_v58 }
  0xc2   :  { %v752_v5 = vsel %vm734_vm6, %v727_v52, %v673_v47  ;;  %2920 = vmatmul.mubr.msk.f32.gmra.mrb[18].mxu1 %vm1332_vm7, %v1243_v49 }
  0xc3   :  { %v1262_v60 = vcombine.low %v1014_v51, %v1013_v35  ;;  %v998_v61 = vrot.slane %v752_v5, %v3460_v58  ;;  %v679_v3 = vpop.permute.xlu1 %678  ;;  %2922 = vmatprep.mubr.msk.f32.mxu1 %vm3034_vm2, %v3033_v50  ;;  %v1260_v62 = vcombine.low %v1252_v40, %v1259_v59  ;;  %v1015_v26 = vcombine.high %v1013_v35, %v1013_v35 }
  0xc4   :  { %v570_v6 = vpop.permute.xlu0 %569 }
  0xc5   :  { %v1261_v7 = vcombine.low %v998_v61, %v1006_v46  ;;  %v730_v55 = vsel %vm107_vm3, %v3322_v56, %v570_v6  ;;  %v1276_v14 = vrot.slane %v1262_v60, %v3460_v58 }
  0xc6   :  { %v3704_v18 = vsel %vm734_vm6, %v730_v55, %v679_v3  ;;  %2923 = vmatmul.mubr.msk.f32.gmra.mrb[20].mxu1 %vm1332_vm7, %v1260_v62 }
  0xc7   :  { %v1269_v39 = vrot.slane %v1261_v7, %v3460_v58  ;;  %v1023_v24 = vcombine.high %v3704_v18, %v3704_v18  ;;  %v1030_v9 = vrot.slane %v3704_v18, %v3460_v58  ;;  %v677_v10 = vpop.permute.xlu1 %676  ;;  %2925 = vmatprep.mubr.msk.f32.mxu1 %vm3034_vm2, %v3033_v50 }
  0xc8   :  { %v568_v56 = vpop.permute.xlu0 %567 }
  0xc9   :  { %v1038_v19 = vcombine.high %v1030_v9, %v1030_v9  ;;  %v729_v17 = vsel %vm107_vm3, %v3291_v36, %v568_v56  ;;  %v1277_v0 = vcombine.low %v1269_v39, %v1276_v14  ;;  %v1037_v2 = vrot.slane %v1023_v24, %v3460_v58 }
  0xca   :  { %v754_v22 = vsel %vm734_vm6, %v729_v17, %v677_v10 }
  0xcb   :  { %v1279_v23 = vcombine.low %v1030_v9, %v1038_v19  ;;  %v1022_v27 = vrot.slane %v754_v22, %v3460_v58  ;;  %2926 = vmatmul.mubr.msk.f32.gmra.mrb[22].mxu1 %vm1332_vm7, %v1277_v0  ;;  %v574_v28 = vpop.permute.xlu1 %573  ;;  %v1039_v63 = vcombine.high %v1037_v2, %v1037_v2 }
  0xcc   :  { %v572_v29 = vpop.permute.xlu0 %571  ;;  %2928 = vmatprep.mubr.msk.f32.mxu1 %vm3034_vm2, %v3033_v50  ;;  %v732_v33 = vsel %vm107_vm3, %v3349_v8, %v574_v28 }
  0xcd   :  { %v1278_v15 = vcombine.low %v1015_v26, %v1022_v27  ;;  %v1293_v34 = vrot.slane %v1279_v23, %v3460_v58  ;;  %v731_v37 = vsel %vm107_vm3, %v3327_v57, %v572_v29  ;;  %v1295_v1 = vcombine.low %v1037_v2, %v1039_v63 }
  0xcf   :  { %v1286_v36 = vrot.slane %v1278_v15, %v3460_v58  ;;  %v683_v54 = vpop.permute.xlu1 %682  ;;  %v1303_v48 = vrot.slane %v1295_v1, %v3460_v58 }
  0xd0   :  { %v3730_v38 = vsel %vm734_vm6, %v732_v33, %v683_v54  ;;  %v681_v41 = vpop.permute.xlu0 %680 }
  0xd1   :  { %v1054_v43 = vrot.slane %v3730_v38, %v3460_v58  ;;  %v756_v44 = vsel %vm734_vm6, %v731_v37, %v681_v41  ;;  %v1294_v25 = vcombine.low %v1286_v36, %v1293_v34  ;;  %v1047_v57 = vcombine.high %v3730_v38, %v3730_v38 }
  0xd2   :  { %v1046_v45 = vrot.slane %v756_v44, %v3460_v58 }
  0xd3   :  { %2929 = vmatmul.mubr.msk.f32.gmra.mrb[24].mxu1 %vm1332_vm7, %v1294_v25  ;;  %v2249_v8 = vpop.permute.xlu1 %2248  ;;  %v1061_v59 = vrot.slane %v1047_v57, %v3460_v58  ;;  %v1062_v5 = vcombine.high %v1054_v43, %v1054_v43 }
  0xd4   :  { %v1296_v46 = vcombine.low %v1046_v45, %v1054_v43  ;;  %v2247_v47 = vpop.permute.xlu0 %2246  ;;  %2931 = vmatprep.mubr.msk.f32.mxu1 %vm3034_vm2, %v3033_v50 }
  0xd5   :  { %v2355_v35 = vsel %vm1332_vm7, %v3480_v20, %v2247_v47  ;;  %v2356_v20 = vsel %vm1332_vm7, %v3473_v12, %v2249_v8  ;;  %v1312_v7 = vcombine.low %v1062_v5, %v1061_v59  ;;  %v1063_v55 = vcombine.high %v1061_v59, %v1061_v59 }
  0xd6   :  { %v1310_v40 = vrot.slane %v1296_v46, %v3460_v58 }
  0xd7   :  { %v576_v49 = vpop.permute.xlu1 %575 }
  0xd8   :  { %v2320_v51 = vpop.permute.xlu0 %2319  ;;  %v1311_v52 = vcombine.low %v1303_v48, %v1310_v40  ;;  %v733_v61 = vsel %vm107_vm3, %v3356_v11, %v576_v49 }
  0xd9   :  { %v2368_v60 = vsel %vm2367_vm8, %v2355_v35, %v2320_v51 }
  0xda   :  { %2932 = vmatmul.mubr.msk.f32.gmra.mrb[26].mxu1 %vm1332_vm7, %v1311_v52  ;;  %2947 = vmatprep.mubr.msk.f32.mxu0 %vm2388_vm9, %v2368_v60 }
  0xdb   :  { %v685_v3 = vpop.permute.xlu1 %684  ;;  %2934 = vmatprep.mubr.msk.f32.mxu1 %vm3034_vm2, %v3033_v50  ;;  %v1320_v50 = vrot.slane %v1312_v7, %v3460_v58  ;;  %vm2101_vm2 = vcmask 58368  }
  0xdc   :  { %v758_v62 = vsel %vm734_vm6, %v733_v61, %v685_v3  ;;  %v2322_v6 = vpop.permute.xlu0 %2321 }
  0xdd   :  { %v1070_v39 = vrot.slane %v758_v62, %v3460_v58  ;;  %v2369_v24 = vsel %vm2367_vm8, %v2356_v20, %v2322_v6 }
  0xde   :  { %2948 = vmatmul.mubr.msk.f32.vlgmr.msra.gmra.mrb[18].mxu0 %vm2388_vm9, %v2369_v24 }
  0xdf   :  { %v1313_v9 = vcombine.low %v1063_v55, %v1070_v39  ;;  %v2253_v11 = vpop.permute.xlu1 %2252 }
  0xe0   :  { %v2251_v10 = vpop.permute.xlu0 %2250  ;;  %v2358_v12 = vsel %vm1332_vm7, %v3559_v4, %v2253_v11 }
  0xe1   :  { %v1327_v14 = vrot.slane %v1313_v9, %v3460_v58  ;;  %v2357_v17 = vsel %vm1332_vm7, %v3517_v13, %v2251_v10 }
  0xe3   :  { %v2326_v56 = vpop.permute.xlu1 %2325  ;;  %v1328_v19 = vcombine.low %v1320_v50, %v1327_v14 }
  0xe4   :  { %v2371_v0 = vsel %vm2367_vm8, %v2358_v12, %v2326_v56  ;;  %v2324_v2 = vpop.permute.xlu0 %2323 }
  0xe5   :  { %v2370_v22 = vsel %vm2367_vm8, %v2357_v17, %v2324_v2  ;;  %2935 = vmatmul.mubr.msk.f32.gmra.mrb[28].mxu1 %vm1332_vm7, %v1328_v19 }
  0xe6   :  { %2950 = vmatprep.mubr.msk.f32.mxu0 %vm2388_vm9, %v2370_v22 }
  0xe7   :  { %2951 = vmatmul.mubr.msk.f32.gmra.mrb[20].mxu0 %vm2388_vm9, %v2371_v0  ;;  %v2257_v23 = vpop.permute.xlu1 %2256 }
  0xe8   :  { %v2255_v26 = vpop.permute.xlu0 %2254  ;;  %v2360_v4 = vsel %vm1332_vm7, %v3603_v42, %v2257_v23 }
  0xe9   :  { %v2359_v13 = vsel %vm1332_vm7, %v3587_v30, %v2255_v26 }
  0xeb   :  { %v2330_v27 = vpop.permute.xlu1 %2329 }
  0xec   :  { %v2373_v28 = vsel %vm2367_vm8, %v2360_v4, %v2330_v27  ;;  %v2328_v29 = vpop.permute.xlu0 %2327 }
  0xed   :  { %v2372_v15 = vsel %vm2367_vm8, %v2359_v13, %v2328_v29  ;;  %v2861_v49 = vpop.f32.mrb[0].mxu0 }
  0xee   :  { %2953 = vmatprep.mubr.msk.f32.mxu0 %vm2388_vm9, %v2372_v15  ;;  %v210_v35 = vpop.f32.mrb[1].mxu0 }
  0xef   :  { %2954 = vmatmul.mubr.msk.f32.gmra.mrb[22].mxu0 %vm2388_vm9, %v2373_v28  ;;  %v2261_v63 = vpop.permute.xlu1 %2260  ;;  %v211_v60 = vadd.f32 %v3573_v16, %v210_v35 }
  0xf0   :  { %v2259_v36 = vpop.permute.xlu0 %2258  ;;  %v2362_v33 = vsel %vm1332_vm7, %v3649_v53, %v2261_v63 }
  0xf1   :  { %v2361_v42 = vsel %vm1332_vm7, %v3623_v32, %v2259_v36  ;;  %v299_v62 = vmax.f32 %v211_v60, 0.0 }
  0xf3   :  { %v2334_v54 = vpop.permute.xlu1 %2333  ;;  %v335_v10 = vcombine.high %v299_v62, %v299_v62 }
  0xf4   :  { %v2375_v30 = vsel %vm2367_vm8, %v2362_v33, %v2334_v54  ;;  %v2332_v34 = vpop.permute.xlu0 %2331  ;;  %v2864_v51 = vpop.f32.mrb[2].mxu0 }
  0xf5   :  { %v2374_v37 = vsel %vm2367_vm8, %v2361_v42, %v2332_v34  ;;  %v220_v52 = vpop.f32.mrb[3].mxu0  ;;  %v226_v61 = vadd.f32 %v2864_v51, %v3573_v16  ;;  %v359_v22 = vcombine.low %v299_v62, %v335_v10 }
  0xf6   :  { %2956 = vmatprep.mubr.msk.f32.mxu0 %vm2388_vm9, %v2374_v37  ;;  %v221_v6 = vadd.f32 %v3573_v16, %v220_v52 }
  0xf7   :  { %2957 = vmatmul.mubr.msk.f32.gmra.mrb[24].mxu0 %vm2388_vm9, %v2375_v30  ;;  %v2265_v41 = vpop.permute.xlu1 %2264  ;;  %v302_v39 = vmax.f32 %v226_v61, 0.0  ;;  %v383_v15 = vsel %vm107_vm3, %v359_v22, -inf }
  0xf8   :  { %v2263_v43 = vpop.permute.xlu0 %2262  ;;  %v2364_v44 = vsel %vm1332_vm7, %v3684_v31, %v2265_v41  ;;  %v2867_v59 = vpop.f32.mrb[4].mxu0  ;;  %v301_v14 = vmax.f32 %v221_v6, 0.0 }
  0xf9   :  { %v2363_v53 = vsel %vm1332_vm7, %v3668_v21, %v2263_v43  ;;  %v230_v5 = vpop.f32.mrb[5].mxu0  ;;  %v236_v50 = vadd.f32 %v2867_v59, %v3573_v16  ;;  %v338_v56 = vcombine.high %v302_v39, %v302_v39 }
  0xfa   :  { %v231_v7 = vadd.f32 %v3573_v16, %v230_v5  ;;  %v337_v23 = vcombine.high %v301_v14, %v301_v14 }
  0xfb   :  { %v2338_v25 = vpop.permute.xlu1 %2337  ;;  %v304_v4 = vmax.f32 %v236_v50, 0.0  ;;  %v361_v27 = vcombine.low %v302_v39, %v338_v56 }
  0xfc   :  { %v2377_v32 = vsel %vm2367_vm8, %v2364_v44, %v2338_v25  ;;  %v2336_v1 = vpop.permute.xlu0 %2335  ;;  %v303_v19 = vmax.f32 %v231_v7, 0.0  ;;  %v394_v36 = vsel %vm384_vm10, %v337_v23, -inf }
  0xfd   :  { %v2376_v45 = vsel %vm2367_vm8, %v2363_v53, %v2336_v1  ;;  %v340_v42 = vcombine.high %v304_v4, %v304_v4  ;;  %v402_v34 = vsel %vm107_vm3, %v361_v27, -inf }
  0xfe   :  { %2959 = vmatprep.mubr.msk.f32.mxu0 %vm2388_vm9, %v2376_v45  ;;  %v339_v13 = vcombine.high %v303_v19, %v303_v19  ;;  %v403_v37 = vsel %vm384_vm10, %v303_v19, -inf }
  0xff   :  { %2960 = vmatmul.mubr.msk.f32.gmra.mrb[26].mxu0 %vm2388_vm9, %v2377_v32  ;;  %v2269_v8 = vpop.permute.xlu1 %2268  ;;  %v412_v53 = vsel %vm384_vm10, %v340_v42, -inf  ;;  %v404_v32 = vmax.f32 %v402_v34, %v403_v37 }
 0x100   :  { %v2267_v46 = vpop.permute.xlu0 %2266  ;;  %v2366_v47 = vsel %vm1332_vm7, %v3730_v38, %v2269_v8  ;;  %v216_v38 = vadd.f32 %v2861_v49, %v3573_v16  ;;  %v362_v30 = vcombine.low %v339_v13, %v304_v4 }
 0x101   :  { %v2365_v31 = vsel %vm1332_vm7, %v3704_v18, %v2267_v46 }
 0x102   :  { %v2870_v18 = vpop.f32.mrb[6].mxu0  ;;  %v300_v20 = vmax.f32 %v216_v38, 0.0  ;;  %v411_v1 = vsel %vm107_vm3, %v362_v30, -inf }
 0x103   :  { %v2342_v57 = vpop.permute.xlu1 %2341  ;;  %v240_v3 = vpop.f32.mrb[7].mxu0  ;;  %v246_v17 = vadd.f32 %v2870_v18, %v3573_v16 }
 0x104   :  { %v2379_v21 = vsel %vm2367_vm8, %v2366_v47, %v2342_v57  ;;  %v2340_v40 = vpop.permute.xlu0 %2339  ;;  %v241_v24 = vadd.f32 %v3573_v16, %v240_v3  ;;  %v336_v11 = vcombine.high %v300_v20, %v300_v20  ;;  %v385_v29 = vsel %vm384_vm10, %v300_v20, -inf }
 0x105   :  { %v2378_v48 = vsel %vm2367_vm8, %v2365_v31, %v2340_v40  ;;  %v306_v28 = vmax.f32 %v246_v17, 0.0  ;;  %v386_v33 = vmax.f32 %v383_v15, %v385_v29  ;;  %v405_v31 = vrot.slane %v404_v32, 4 }
 0x106   :  { %2962 = vmatprep.mubr.msk.f32.mxu0 %vm2388_vm9, %v2378_v48  ;;  %v305_v0 = vmax.f32 %v241_v24, 0.0  ;;  %v360_v26 = vcombine.low %v336_v11, %v301_v14 }
 0x107   :  { %2963 = vmatmul.mubr.msk.f32.gmra.mrb[28].mxu0 %vm2388_vm9, %v2379_v21  ;;  %v342_v41 = vcombine.high %v306_v28, %v306_v28  ;;  %v387_v44 = vrot.slane %v386_v33, 4  ;;  %v421_v45 = vsel %vm384_vm10, %v306_v28, -inf  ;;  %v413_v21 = vmax.f32 %v411_v1, %v412_v53 }
 0x108   :  { %v393_v63 = vsel %vm107_vm3, %v360_v26, -inf  ;;  %v341_v43 = vcombine.high %v305_v0, %v305_v0  ;;  %v406_v59 = vmax.f32 %v404_v32, %v405_v31 }
 0x109   :  { %v395_v54 = vmax.f32 %v393_v63, %v394_v36  ;;  %v388_v47 = vmax.f32 %v386_v33, %v387_v44  ;;  %v414_v5 = vrot.slane %v413_v21, 4 }
 0x10a   :  { %v363_v8 = vcombine.low %v305_v0, %v341_v43  ;;  %v407_v62 = vrot.slane %v406_v59, 2 }
 0x10b   :  { %v396_v25 = vrot.slane %v395_v54, 4  ;;  %v389_v51 = vrot.slane %v388_v47, 2  ;;  %v415_v6 = vmax.f32 %v413_v21, %v414_v5 }
 0x10c   :  { %v2873_v55 = vpop.f32.mrb[8].mxu0  ;;  %v420_v40 = vsel %vm107_vm3, %v363_v8, -inf  ;;  %v408_v11 = vmax.f32 %v406_v59, %v407_v62 }
 0x10d   :  { %v250_v9 = vpop.f32.mrb[9].mxu0  ;;  %v256_v46 = vadd.f32 %v2873_v55, %v3573_v16  ;;  %v397_v57 = vmax.f32 %v395_v54, %v396_v25  ;;  %v422_v38 = vmax.f32 %v420_v40, %v421_v45  ;;  %v390_v3 = vmax.f32 %v388_v47, %v389_v51 }
 0x10e   :  { %v251_v49 = vadd.f32 %v3573_v16, %v250_v9  ;;  %v416_v10 = vrot.slane %v415_v6, 2  ;;  %v409_v23 = vrot.slane %v408_v11, 1 }
 0x10f   :  { %v308_v48 = vmax.f32 %v256_v46, 0.0  ;;  %v398_v52 = vrot.slane %v397_v57, 2  ;;  %v423_v7 = vrot.slane %v422_v38, 4  ;;  %v391_v24 = vrot.slane %v390_v3, 1 }
 0x110   :  { %v2876_v12 = vpop.f32.mrb[10].mxu0  ;;  %v307_v18 = vmax.f32 %v251_v49, 0.0  ;;  %v417_v27 = vmax.f32 %v415_v6, %v416_v10  ;;  %v410_v36 = vmax.f32 %v408_v11, %v409_v23 }
 0x111   :  { %v3810_v2 = vpop.f32.mrb[11].mxu0  ;;  %v266_v35 = vadd.f32 %v2876_v12, %v3573_v16  ;;  %v344_v60 = vcombine.high %v308_v48, %v308_v48  ;;  %v399_v20 = vmax.f32 %v397_v57, %v398_v52  ;;  %v424_v50 = vmax.f32 %v422_v38, %v423_v7 }
 0x112   :  { %v343_v55 = vcombine.high %v307_v18, %v307_v18  ;;  %v364_v39 = vcombine.low %v342_v41, %v307_v18  ;;  %v392_v0 = vmax.f32 %v390_v3, %v391_v24  ;;  %v261_v29 = vadd.f32 %v3573_v16, %v3810_v2 }
 0x113   :  { %v310_v61 = vmax.f32 %v266_v35, 0.0  ;;  %v400_v9 = vrot.slane %v399_v20, 1  ;;  %v365_v12 = vcombine.low %v308_v48, %v344_v60  ;;  %v425_v13 = vrot.slane %v424_v50, 2 }
 0x114   :  { %v429_v56 = vsel %vm107_vm3, %v364_v39, -inf  ;;  %v430_v19 = vsel %vm384_vm10, %v343_v55, -inf  ;;  %v309_v30 = vmax.f32 %v261_v29, 0.0  ;;  %v418_v25 = vrot.slane %v417_v27, 1 }
 0x115   :  { %v401_v22 = vmax.f32 %v399_v20, %v400_v9  ;;  %v346_v26 = vcombine.high %v310_v61, %v310_v61  ;;  %v431_v28 = vmax.f32 %v429_v56, %v430_v19  ;;  %v426_v54 = vmax.f32 %v424_v50, %v425_v13 }
 0x116   :  { %v438_v34 = vsel %vm107_vm3, %v365_v12, -inf  ;;  %v345_v32 = vcombine.high %v309_v30, %v309_v30  ;;  %v439_v1 = vsel %vm384_vm10, %v309_v30, -inf  ;;  %v419_v11 = vmax.f32 %v417_v27, %v418_v25 }
 0x117   :  { %v2659_v63 = vsel %vm2658_vm11, %v401_v22, %v392_v0  ;;  %v432_v42 = vrot.slane %v431_v28, 4  ;;  %v448_v43 = vsel %vm384_vm10, %v346_v26, -inf  ;;  %v440_v45 = vmax.f32 %v438_v34, %v439_v1 }
 0x118   :  { %v2661_v41 = vsel %vm2660_vm12, %v410_v36, %v2659_v63  ;;  %v427_v57 = vrot.slane %v426_v54, 1  ;;  %v366_v21 = vcombine.low %v345_v32, %v310_v61 }
 0x119   :  { %v433_v53 = vmax.f32 %v431_v28, %v432_v42  ;;  %v441_v48 = vrot.slane %v440_v45, 4  ;;  %v2663_v36 = vsel %vm2662_vm13, %v419_v11, %v2661_v41 }
 0x11a   :  { %v2879_v14 = vpop.f32.mrb[12].mxu0  ;;  %v447_v59 = vsel %vm107_vm3, %v366_v21, -inf  ;;  %v428_v0 = vmax.f32 %v426_v54, %v427_v57 }
 0x11b   :  { %v270_v17 = vpop.f32.mrb[13].mxu0  ;;  %v276_v44 = vadd.f32 %v2879_v14, %v3573_v16  ;;  %v434_v31 = vrot.slane %v433_v53, 2  ;;  %v442_v60 = vmax.f32 %v440_v45, %v441_v48  ;;  %v449_v18 = vmax.f32 %v447_v59, %v448_v43 }
 0x11c   :  { %v271_v2 = vadd.f32 %v3573_v16, %v270_v17 }
 0x11d   :  { %v312_v8 = vmax.f32 %v276_v44, 0.0  ;;  %v435_v52 = vmax.f32 %v433_v53, %v434_v31  ;;  %v443_v55 = vrot.slane %v442_v60, 2  ;;  %v450_v39 = vrot.slane %v449_v18, 4 }
 0x11e   :  { %v2882_v4 = vpop.f32.mrb[14].mxu0  ;;  %v311_v46 = vmax.f32 %v271_v2, 0.0 }
 0x11f   :  { %v280_v15 = vpop.f32.mrb[15].mxu0  ;;  %v286_v47 = vadd.f32 %v2882_v4, %v3573_v16  ;;  %v348_v49 = vcombine.high %v312_v8, %v312_v8  ;;  %v436_v62 = vrot.slane %v435_v52, 1  ;;  %v457_v61 = vsel %vm384_vm10, %v312_v8, -inf }
 0x120   :  { %v281_v40 = vadd.f32 %v3573_v16, %v280_v15  ;;  %v347_v35 = vcombine.high %v311_v46, %v311_v46  ;;  %v444_v12 = vmax.f32 %v442_v60, %v443_v55  ;;  %v451_v56 = vmax.f32 %v449_v18, %v450_v39  ;;  %v3861_v55 = vpop.permute.xlu0 %1329 }
 0x121   :  { %v314_v51 = vmax.f32 %v286_v47, 0.0  ;;  %v437_v22 = vmax.f32 %v435_v52, %v436_v62 }
 0x122   :  { %v2885_v33 = vpop.f32.mrb[16].mxu0  ;;  %v313_v5 = vmax.f32 %v281_v40, 0.0  ;;  %v367_v3 = vcombine.low %v311_v46, %v347_v35  ;;  %v445_v4 = vrot.slane %v444_v12, 1  ;;  %v452_v13 = vrot.slane %v451_v56, 2 }
 0x123   :  { %v290_v37 = vpop.f32.mrb[17].mxu0  ;;  %v296_v38 = vadd.f32 %v2885_v33, %v3573_v16  ;;  %v350_v20 = vcombine.high %v314_v51, %v314_v51 }
 0x124   :  { %v349_v6 = vcombine.high %v313_v5, %v313_v5  ;;  %v368_v7 = vcombine.low %v348_v49, %v313_v5  ;;  %v456_v24 = vsel %vm107_vm3, %v367_v3, -inf  ;;  %v291_v26 = vadd.f32 %v3573_v16, %v290_v37 }
 0x125   :  { %v369_v9 = vcombine.low %v314_v51, %v350_v20  ;;  %v458_v10 = vmax.f32 %v456_v24, %v457_v61  ;;  %v316_v17 = vmax.f32 %v296_v38, 0.0  ;;  %v446_v33 = vmax.f32 %v444_v12, %v445_v4 }
 0x126   :  { %v465_v14 = vsel %vm107_vm3, %v368_v7, -inf  ;;  %v466_v50 = vsel %vm384_vm10, %v349_v6, -inf  ;;  %v315_v63 = vmax.f32 %v291_v26, 0.0  ;;  %v453_v30 = vmax.f32 %v451_v56, %v452_v13 }
 0x127   :  { %v467_v19 = vmax.f32 %v465_v14, %v466_v50  ;;  %v459_v23 = vrot.slane %v458_v10, 4  ;;  %v474_v29 = vsel %vm107_vm3, %v369_v9, -inf  ;;  %v352_v15 = vcombine.high %v316_v17, %v316_v17 }
 0x128   :  { %v351_v54 = vcombine.high %v315_v63, %v315_v63  ;;  %v475_v43 = vsel %vm384_vm10, %v315_v63, -inf  ;;  %v2665_v16 = vsel %vm2664_vm14, %v428_v0, %v2663_v36  ;;  %v454_v2 = vrot.slane %v453_v30, 1 }
 0x129   :  { %v468_v28 = vrot.slane %v467_v19, 4  ;;  %v460_v27 = vmax.f32 %v458_v10, %v459_v23  ;;  %v476_v44 = vmax.f32 %v474_v29, %v475_v43  ;;  %v2667_v25 = vsel %vm2666_vm15, %v437_v22, %v2665_v16 }
 0x12a   :  { %v484_v32 = vsel %vm384_vm10, %v352_v15, -inf  ;;  %v370_v1 = vcombine.low %v351_v54, %v316_v17  ;;  %v2669_v41 = vsel %vm2668_vm0, %v446_v33, %v2667_v25  ;;  %v455_v46 = vmax.f32 %v453_v30, %v454_v2 }
 0x12b   :  { %v469_v42 = vmax.f32 %v467_v19, %v468_v28  ;;  %v461_v34 = vrot.slane %v460_v27, 2  ;;  %v477_v8 = vrot.slane %v476_v44, 4 }
 0x12c   :  { %v483_v57 = vsel %vm107_vm3, %v370_v1, -inf  ;;  %v3854_v48 = vsel %vm2670_vm1, %v455_v46, %v2669_v41 }
 0x12d   :  { %v470_v37 = vrot.slane %v469_v42, 2  ;;  %v462_v53 = vmax.f32 %v460_v27, %v461_v34  ;;  %v478_v21 = vmax.f32 %v476_v44, %v477_v8  ;;  %v485_v40 = vmax.f32 %v483_v57, %v484_v32 }
 0x12f   :  { %v471_v45 = vmax.f32 %v469_v42, %v470_v37  ;;  %v463_v47 = vrot.slane %v462_v53, 1  ;;  %v479_v51 = vrot.slane %v478_v21, 2  ;;  %v486_v52 = vrot.slane %v485_v40, 4 }
 0x131   :  { %v472_v31 = vrot.slane %v471_v45, 1  ;;  %v464_v49 = vmax.f32 %v462_v53, %v463_v47  ;;  %v480_v59 = vmax.f32 %v478_v21, %v479_v51  ;;  %v487_v5 = vmax.f32 %v485_v40, %v486_v52 }
 0x133   :  { %v473_v35 = vmax.f32 %v471_v45, %v472_v31  ;;  %v481_v60 = vrot.slane %v480_v59, 1  ;;  %v488_v18 = vrot.slane %v487_v5, 2 }
 0x135   :  { %v2672_v38 = vsel %vm2658_vm11, %v473_v35, %v464_v49  ;;  %v482_v3 = vmax.f32 %v480_v59, %v481_v60  ;;  %v489_v20 = vmax.f32 %v487_v5, %v488_v18 }
 0x137   :  { %v490_v62 = vrot.slane %v489_v20, 1  ;;  %v2673_v61 = vsel %vm2660_vm12, %v482_v3, %v2672_v38 }
 0x139   :  { %v491_v6 = vmax.f32 %v489_v20, %v490_v62 }
 0x13b   :  { %v3859_v7 = vsel %vm2662_vm13, %v491_v6, %v2673_v61 }
 0x15d   :  { %v1429_v39 = vpop.f32.mrb[0].mxu1 }
 0x15e   :  { %v2894_v24 = vpop.f32.mrb[1].mxu1  ;;  %v1430_v9 = vadd.f32 %v1429_v39, %v3861_v55 }
 0x160   :  { %v1503_v11 = vmax.f32 %v1430_v9, 0.0 }
 0x161   :  { %v1434_v10 = vpop.f32.mrb[2].mxu1 }
 0x162   :  { %v1435_v14 = vadd.f32 %v1434_v10, %v3861_v55  ;;  %v1533_v50 = vcombine.high %v1503_v11, %v1503_v11  ;;  %v1540_v12 = vrot.slane %v1503_v11, %v3460_v58  ;;  %v2897_v56 = vpop.f32.mrb[3].mxu1 }
 0x164   :  { %v1504_v19 = vmax.f32 %v1435_v14, 0.0  ;;  %v1547_v17 = vrot.slane %v1533_v50, %v3460_v58  ;;  %v1548_v0 = vcombine.high %v1540_v12, %v1540_v12 }
 0x166   :  { %v1549_v22 = vcombine.high %v1547_v17, %v1547_v17  ;;  %v1550_v23 = vcombine.high %v1504_v19, %v1504_v19  ;;  %v1557_v26 = vrot.slane %v1504_v19, %v3460_v58  ;;  %v1788_v4 = vcombine.low %v1540_v12, %v1548_v0  ;;  %v1439_v13 = vpop.f32.mrb[4].mxu1 }
 0x167   :  { %v1440_v28 = vadd.f32 %v1439_v13, %v3861_v55  ;;  %v2900_v29 = vpop.f32.mrb[5].mxu1 }
 0x168   :  { %v1564_v27 = vrot.slane %v1550_v23, %v3460_v58  ;;  %v1565_v15 = vcombine.high %v1557_v26, %v1557_v26  ;;  %v1789_v63 = vcombine.low %v1547_v17, %v1549_v22  ;;  %v1796_v33 = vrot.slane %v1788_v4, %v3460_v58 }
 0x169   :  { %v1505_v36 = vmax.f32 %v1440_v28, 0.0  ;;  %v1811_v30 = vrot.slane %v1557_v26, %v3460_v58 }
 0x16a   :  { %v1803_v42 = vrot.slane %v1789_v63, %v3460_v58  ;;  %v1566_v34 = vcombine.high %v1564_v27, %v1564_v27  ;;  %v1812_v54 = vcombine.low %v1565_v15, %v1564_v27 }
 0x16b   :  { %v1567_v43 = vcombine.high %v1505_v36, %v1505_v36  ;;  %v1574_v16 = vrot.slane %v1505_v36, %v3460_v58  ;;  %v2102_v1 = vsel %vm2101_vm2, %v1811_v30, -inf }
 0x16c   :  { %v1804_v37 = vcombine.low %v1796_v33, %v1803_v42  ;;  %v1820_v8 = vrot.slane %v1812_v54, %v3460_v58 }
 0x16d   :  { %v1581_v44 = vrot.slane %v1567_v43, %v3460_v58  ;;  %v1582_v2 = vcombine.high %v1574_v16, %v1574_v16  ;;  %v1813_v25 = vcombine.low %v1566_v34, %v1574_v16  ;;  %v1444_v53 = vpop.f32.mrb[6].mxu1 }
 0x16e   :  { %v2100_v32 = vsel %vm107_vm3, %v1804_v37, -inf  ;;  %v1445_v41 = vadd.f32 %v1444_v53, %v3861_v55  ;;  %v2903_v45 = vpop.f32.mrb[7].mxu1 }
 0x16f   :  { %v2103_v46 = vmax.f32 %v2100_v32, %v2102_v1  ;;  %v1827_v47 = vrot.slane %v1813_v25, %v3460_v58  ;;  %v1835_v57 = vrot.slane %v1582_v2, %v3460_v58  ;;  %v1583_v31 = vcombine.high %v1581_v44, %v1581_v44 }
 0x170   :  { %v1506_v21 = vmax.f32 %v1445_v41, 0.0 }
 0x171   :  { %v2104_v40 = vrot.slane %v2103_v46, 4  ;;  %v1828_v49 = vcombine.low %v1820_v8, %v1827_v47  ;;  %v2111_v5 = vsel %vm2101_vm2, %v1835_v57, -inf  ;;  %v1836_v38 = vcombine.low %v1581_v44, %v1583_v31 }
 0x172   :  { %v1584_v35 = vcombine.high %v1506_v21, %v1506_v21  ;;  %v1591_v51 = vrot.slane %v1506_v21, %v3460_v58 }
 0x173   :  { %v2105_v52 = vmax.f32 %v2103_v46, %v2104_v40  ;;  %v2110_v59 = vsel %vm107_vm3, %v1828_v49, -inf  ;;  %v1844_v10 = vrot.slane %v1836_v38, %v3460_v58 }
 0x174   :  { %v2112_v60 = vmax.f32 %v2110_v59, %v2111_v5  ;;  %v1598_v18 = vrot.slane %v1584_v35, %v3460_v58  ;;  %v1599_v3 = vcombine.high %v1591_v51, %v1591_v51 }
 0x175   :  { %v2106_v20 = vrot.slane %v2105_v52, 2  ;;  %v1449_v62 = vpop.f32.mrb[8].mxu1 }
 0x176   :  { %v2113_v61 = vrot.slane %v2112_v60, 4  ;;  %v1837_v6 = vcombine.low %v1591_v51, %v1599_v3  ;;  %v1450_v39 = vadd.f32 %v1449_v62, %v3861_v55  ;;  %v2906_v24 = vpop.f32.mrb[9].mxu1  ;;  %v1859_v11 = vrot.slane %v1598_v18, %v3460_v58 }
 0x177   :  { %v2107_v9 = vmax.f32 %v2105_v52, %v2106_v20  ;;  %v1600_v13 = vcombine.high %v1598_v18, %v1598_v18 }
 0x178   :  { %v2114_v14 = vmax.f32 %v2112_v60, %v2113_v61  ;;  %v1851_v50 = vrot.slane %v1837_v6, %v3460_v58  ;;  %v1507_v12 = vmax.f32 %v1450_v39, 0.0  ;;  %v2120_v4 = vsel %vm2101_vm2, %v1859_v11, -inf }
 0x179   :  { %v2108_v56 = vrot.slane %v2107_v9, 1  ;;  %v1454_v19 = vpop.f32.mrb[10].mxu1 }
 0x17a   :  { %v2115_v17 = vrot.slane %v2114_v14, 2  ;;  %v1852_v0 = vcombine.low %v1844_v10, %v1851_v50  ;;  %v1601_v22 = vcombine.high %v1507_v12, %v1507_v12  ;;  %v1608_v23 = vrot.slane %v1507_v12, %v3460_v58  ;;  %v2909_v26 = vpop.f32.mrb[11].mxu1 }
 0x17b   :  { %v1455_v28 = vadd.f32 %v1454_v19, %v3861_v55  ;;  %v2109_v30 = vmax.f32 %v2107_v9, %v2108_v56 }
 0x17c   :  { %v2116_v29 = vmax.f32 %v2114_v14, %v2115_v17  ;;  %v2119_v27 = vsel %vm107_vm3, %v1852_v0, -inf  ;;  %v1615_v15 = vrot.slane %v1601_v22, %v3460_v58  ;;  %v1616_v63 = vcombine.high %v1608_v23, %v1608_v23 }
 0x17d   :  { %v2121_v36 = vmax.f32 %v2119_v27, %v2120_v4  ;;  %v1860_v33 = vcombine.low %v1600_v13, %v1608_v23  ;;  %v1508_v42 = vmax.f32 %v1455_v28, 0.0 }
 0x17e   :  { %v2117_v34 = vrot.slane %v2116_v29, 1  ;;  %v1617_v54 = vcombine.high %v1615_v15, %v1615_v15  ;;  %v1861_v43 = vcombine.low %v1616_v63, %v1615_v15  ;;  %v1459_v16 = vpop.f32.mrb[12].mxu1 }
 0x17f   :  { %v2122_v37 = vrot.slane %v2121_v36, 4  ;;  %v1868_v44 = vrot.slane %v1860_v33, %v3460_v58  ;;  %v1618_v2 = vcombine.high %v1508_v42, %v1508_v42  ;;  %v1625_v25 = vrot.slane %v1508_v42, %v3460_v58  ;;  %v2912_v53 = vpop.f32.mrb[13].mxu1 }
 0x180   :  { %v2118_v32 = vmax.f32 %v2116_v29, %v2117_v34  ;;  %v1875_v1 = vrot.slane %v1861_v43, %v3460_v58  ;;  %v1883_v41 = vrot.slane %v1617_v54, %v3460_v58  ;;  %v1460_v45 = vadd.f32 %v1459_v16, %v3861_v55 }
 0x181   :  { %v2123_v8 = vmax.f32 %v2121_v36, %v2122_v37  ;;  %v1632_v46 = vrot.slane %v1618_v2, %v3460_v58  ;;  %v1633_v47 = vcombine.high %v1625_v25, %v1625_v25 }
 0x182   :  { %v1876_v57 = vcombine.low %v1868_v44, %v1875_v1  ;;  %v1509_v31 = vmax.f32 %v1460_v45, 0.0  ;;  %v2689_v21 = vsel %vm2658_vm11, %v2118_v32, %v2109_v30  ;;  %v2129_v52 = vsel %vm2101_vm2, %v1883_v41, -inf }
 0x183   :  { %v2124_v40 = vrot.slane %v2123_v8, 2  ;;  %v1634_v49 = vcombine.high %v1632_v46, %v1632_v46  ;;  %v1884_v35 = vcombine.low %v1625_v25, %v1633_v47 }
 0x184   :  { %v2128_v51 = vsel %vm107_vm3, %v1876_v57, -inf  ;;  %v1635_v59 = vcombine.high %v1509_v31, %v1509_v31  ;;  %v1642_v5 = vrot.slane %v1509_v31, %v3460_v58 }
 0x185   :  { %v2125_v38 = vmax.f32 %v2123_v8, %v2124_v40  ;;  %v2130_v60 = vmax.f32 %v2128_v51, %v2129_v52  ;;  %v1885_v18 = vcombine.low %v1632_v46, %v1634_v49  ;;  %v1892_v3 = vrot.slane %v1884_v35, %v3460_v58 }
 0x186   :  { %v1649_v20 = vrot.slane %v1635_v59, %v3460_v58  ;;  %v1650_v62 = vcombine.high %v1642_v5, %v1642_v5  ;;  %v1907_v61 = vrot.slane %v1642_v5, %v3460_v58  ;;  %v1464_v6 = vpop.f32.mrb[14].mxu1 }
 0x187   :  { %v2126_v39 = vrot.slane %v2125_v38, 1  ;;  %v2131_v24 = vrot.slane %v2130_v60, 4  ;;  %v1899_v9 = vrot.slane %v1885_v18, %v3460_v58  ;;  %v1465_v11 = vadd.f32 %v1464_v6, %v3861_v55  ;;  %v2915_v10 = vpop.f32.mrb[15].mxu1 }
 0x188   :  { %v1908_v19 = vcombine.low %v1650_v62, %v1649_v20  ;;  %v2138_v17 = vsel %vm2101_vm2, %v1907_v61, -inf  ;;  %v1651_v0 = vcombine.high %v1649_v20, %v1649_v20 }
 0x189   :  { %v2127_v14 = vmax.f32 %v2125_v38, %v2126_v39  ;;  %v2132_v50 = vmax.f32 %v2130_v60, %v2131_v24  ;;  %v1900_v12 = vcombine.low %v1892_v3, %v1899_v9  ;;  %v1510_v56 = vmax.f32 %v1465_v11, 0.0 }
 0x18a   :  { %v1916_v33 = vrot.slane %v1908_v19, %v3460_v58 }
 0x18b   :  { %v2133_v22 = vrot.slane %v2132_v50, 2  ;;  %v2137_v23 = vsel %vm107_vm3, %v1900_v12, -inf  ;;  %v1652_v26 = vcombine.high %v1510_v56, %v1510_v56  ;;  %v1659_v4 = vrot.slane %v1510_v56, %v3460_v58 }
 0x18c   :  { %v2139_v13 = vmax.f32 %v2137_v23, %v2138_v17  ;;  %v2690_v28 = vsel %vm2660_vm12, %v2127_v14, %v2689_v21 }
 0x18d   :  { %v2134_v29 = vmax.f32 %v2132_v50, %v2133_v22  ;;  %v1666_v27 = vrot.slane %v1652_v26, %v3460_v58  ;;  %v1667_v15 = vcombine.high %v1659_v4, %v1659_v4  ;;  %v1909_v63 = vcombine.low %v1651_v0, %v1659_v4  ;;  %v1469_v36 = vpop.f32.mrb[16].mxu1 }
 0x18e   :  { %v2140_v42 = vrot.slane %v2139_v13, 4  ;;  %v1470_v30 = vadd.f32 %v1469_v36, %v3861_v55  ;;  %v2918_v34 = vpop.f32.mrb[17].mxu1 }
 0x18f   :  { %v1668_v54 = vcombine.high %v1666_v27, %v1666_v27  ;;  %v1923_v43 = vrot.slane %v1909_v63, %v3460_v58  ;;  %v1931_v16 = vrot.slane %v1667_v15, %v3460_v58  ;;  %v2135_v37 = vrot.slane %v2134_v29, 1 }
 0x190   :  { %v2141_v44 = vmax.f32 %v2139_v13, %v2140_v42  ;;  %v1511_v2 = vmax.f32 %v1470_v30, 0.0 }
 0x191   :  { %v1924_v25 = vcombine.low %v1916_v33, %v1923_v43  ;;  %v2136_v53 = vmax.f32 %v2134_v29, %v2135_v37  ;;  %v1932_v45 = vcombine.low %v1666_v27, %v1668_v54  ;;  %v2147_v46 = vsel %vm2101_vm2, %v1931_v16, -inf }
 0x192   :  { %v2142_v32 = vrot.slane %v2141_v44, 2  ;;  %v1669_v1 = vcombine.high %v1511_v2, %v1511_v2  ;;  %v1676_v41 = vrot.slane %v1511_v2, %v3460_v58 }
 0x193   :  { %v2146_v8 = vsel %vm107_vm3, %v1924_v25, -inf  ;;  %v2691_v47 = vsel %vm2662_vm13, %v2136_v53, %v2690_v28  ;;  %v1940_v5 = vrot.slane %v1932_v45, %v3460_v58 }
 0x194   :  { %v2143_v57 = vmax.f32 %v2141_v44, %v2142_v32  ;;  %v2148_v31 = vmax.f32 %v2146_v8, %v2147_v46  ;;  %v1683_v21 = vrot.slane %v1669_v1, %v3460_v58  ;;  %v1684_v40 = vcombine.high %v1676_v41, %v1676_v41 }
 0x195   :  { %v1474_v49 = vpop.f32.mrb[18].mxu1 }
 0x196   :  { %v2144_v35 = vrot.slane %v2143_v57, 1  ;;  %v2149_v51 = vrot.slane %v2148_v31, 4  ;;  %v1933_v52 = vcombine.low %v1676_v41, %v1684_v40  ;;  %v2921_v59 = vpop.f32.mrb[19].mxu1  ;;  %v1475_v38 = vadd.f32 %v1474_v49, %v3861_v55 }
 0x197   :  { %v1955_v3 = vrot.slane %v1683_v21, %v3460_v58  ;;  %v1685_v10 = vcombine.high %v1683_v21, %v1683_v21 }
 0x198   :  { %v2150_v60 = vmax.f32 %v2148_v31, %v2149_v51  ;;  %v1947_v18 = vrot.slane %v1933_v52, %v3460_v58  ;;  %v2145_v20 = vmax.f32 %v2143_v57, %v2144_v35  ;;  %v1512_v62 = vmax.f32 %v1475_v38, 0.0 }
 0x199   :  { %v1479_v61 = vpop.f32.mrb[20].mxu1  ;;  %v2156_v56 = vsel %vm2101_vm2, %v1955_v3, -inf }
 0x19a   :  { %v2151_v6 = vrot.slane %v2150_v60, 2  ;;  %v1948_v39 = vcombine.low %v1940_v5, %v1947_v18  ;;  %v1480_v24 = vadd.f32 %v1479_v61, %v3861_v55  ;;  %v2924_v9 = vpop.f32.mrb[21].mxu1  ;;  %v2692_v11 = vsel %vm2664_vm14, %v2145_v20, %v2691_v47 }
 0x19b   :  { %v1686_v14 = vcombine.high %v1512_v62, %v1512_v62  ;;  %v1693_v50 = vrot.slane %v1512_v62, %v3460_v58 }
 0x19c   :  { %v2155_v12 = vsel %vm107_vm3, %v1948_v39, -inf  ;;  %v1513_v19 = vmax.f32 %v1480_v24, 0.0  ;;  %v2152_v17 = vmax.f32 %v2150_v60, %v2151_v6 }
 0x19d   :  { %v2157_v0 = vmax.f32 %v2155_v12, %v2156_v56  ;;  %v1700_v22 = vrot.slane %v1686_v14, %v3460_v58  ;;  %v1701_v23 = vcombine.high %v1693_v50, %v1693_v50  ;;  %v1956_v26 = vcombine.low %v1685_v10, %v1693_v50 }
 0x19e   :  { %v1703_v4 = vcombine.high %v1513_v19, %v1513_v19  ;;  %v1710_v13 = vrot.slane %v1513_v19, %v3460_v58  ;;  %v1484_v28 = vpop.f32.mrb[22].mxu1  ;;  %v2153_v29 = vrot.slane %v2152_v17, 1 }
 0x19f   :  { %v2158_v27 = vrot.slane %v2157_v0, 4  ;;  %v1702_v15 = vcombine.high %v1700_v22, %v1700_v22  ;;  %v1957_v63 = vcombine.low %v1701_v23, %v1700_v22  ;;  %v2927_v36 = vpop.f32.mrb[23].mxu1  ;;  %v1485_v30 = vadd.f32 %v1484_v28, %v3861_v55 }
 0x1a0   :  { %v1717_v33 = vrot.slane %v1703_v4, %v3460_v58  ;;  %v1718_v42 = vcombine.high %v1710_v13, %v1710_v13  ;;  %v2154_v34 = vmax.f32 %v2152_v17, %v2153_v29  ;;  %v1964_v43 = vrot.slane %v1956_v26, %v3460_v58 }
 0x1a1   :  { %v2159_v54 = vmax.f32 %v2157_v0, %v2158_v27  ;;  %v1971_v16 = vrot.slane %v1957_v63, %v3460_v58  ;;  %v1979_v37 = vrot.slane %v1702_v15, %v3460_v58  ;;  %v1514_v25 = vmax.f32 %v1485_v30, 0.0  ;;  %v3957_v15 = vpop.permute.xlu1 %2385 }
 0x1a2   :  { %v1719_v44 = vcombine.high %v1717_v33, %v1717_v33  ;;  %v1980_v2 = vcombine.low %v1710_v13, %v1718_v42  ;;  %v2693_v53 = vsel %vm2666_vm15, %v2154_v34, %v2692_v11 }
 0x1a3   :  { %v1972_v32 = vcombine.low %v1964_v43, %v1971_v16  ;;  %v2160_v1 = vrot.slane %v2159_v54, 2  ;;  %v1720_v45 = vcombine.high %v1514_v25, %v1514_v25  ;;  %v1727_v8 = vrot.slane %v1514_v25, %v3460_v58 }
 0x1a4   :  { %v1981_v41 = vcombine.low %v1717_v33, %v1719_v44  ;;  %v2165_v47 = vsel %vm2101_vm2, %v1979_v37, -inf  ;;  %v1988_v57 = vrot.slane %v1980_v2, %v3460_v58 }
 0x1a5   :  { %v2164_v46 = vsel %vm107_vm3, %v1972_v32, -inf  ;;  %v2161_v31 = vmax.f32 %v2159_v54, %v2160_v1  ;;  %v1734_v49 = vrot.slane %v1720_v45, %v3460_v58  ;;  %v1735_v35 = vcombine.high %v1727_v8, %v1727_v8 }
 0x1a6   :  { %v2166_v21 = vmax.f32 %v2164_v46, %v2165_v47  ;;  %v1995_v40 = vrot.slane %v1981_v41, %v3460_v58  ;;  %v1489_v51 = vpop.f32.mrb[24].mxu1  ;;  %v2003_v52 = vrot.slane %v1727_v8, %v3460_v58 }
 0x1a7   :  { %v1490_v59 = vadd.f32 %v1489_v51, %v3861_v55  ;;  %v2930_v5 = vpop.f32.mrb[25].mxu1  ;;  %v2162_v38 = vrot.slane %v2161_v31, 1  ;;  %v2004_v3 = vcombine.low %v1735_v35, %v1734_v49  ;;  %v1736_v39 = vcombine.high %v1734_v49, %v1734_v49 }
 0x1a8   :  { %v1996_v60 = vcombine.low %v1988_v57, %v1995_v40  ;;  %v2167_v18 = vrot.slane %v2166_v21, 4  ;;  %v2174_v6 = vsel %vm2101_vm2, %v2003_v52, -inf }
 0x1a9   :  { %v1515_v20 = vmax.f32 %v1490_v59, 0.0  ;;  %v2163_v62 = vmax.f32 %v2161_v31, %v2162_v38  ;;  %v2012_v22 = vrot.slane %v2004_v3, %v3460_v58 }
 0x1aa   :  { %v2173_v61 = vsel %vm107_vm3, %v1996_v60, -inf  ;;  %v2168_v24 = vmax.f32 %v2166_v21, %v2167_v18 }
 0x1ab   :  { %v2175_v9 = vmax.f32 %v2173_v61, %v2174_v6  ;;  %v1737_v11 = vcombine.high %v1515_v20, %v1515_v20  ;;  %v1744_v10 = vrot.slane %v1515_v20, %v3460_v58  ;;  %v2694_v14 = vsel %vm2668_vm0, %v2163_v62, %v2693_v53 }
 0x1ac   :  { %v2169_v50 = vrot.slane %v2168_v24, 2 }
 0x1ad   :  { %v2176_v12 = vrot.slane %v2175_v9, 4  ;;  %v1751_v56 = vrot.slane %v1737_v11, %v3460_v58  ;;  %v1752_v19 = vcombine.high %v1744_v10, %v1744_v10  ;;  %v2005_v17 = vcombine.low %v1736_v39, %v1744_v10  ;;  %v1494_v0 = vpop.f32.mrb[26].mxu1 }
 0x1ae   :  { %v1495_v23 = vadd.f32 %v1494_v0, %v3861_v55  ;;  %v2933_v26 = vpop.f32.mrb[27].mxu1  ;;  %v2170_v4 = vmax.f32 %v2168_v24, %v2169_v50 }
 0x1af   :  { %v2177_v13 = vmax.f32 %v2175_v9, %v2176_v12  ;;  %v1753_v28 = vcombine.high %v1751_v56, %v1751_v56  ;;  %v2019_v29 = vrot.slane %v2005_v17, %v3460_v58  ;;  %v2027_v27 = vrot.slane %v1752_v19, %v3460_v58 }
 0x1b0   :  { %v1516_v63 = vmax.f32 %v1495_v23, 0.0  ;;  %v2171_v36 = vrot.slane %v2170_v4, 1 }
 0x1b1   :  { %v2178_v33 = vrot.slane %v2177_v13, 2  ;;  %v2020_v42 = vcombine.low %v2012_v22, %v2019_v29  ;;  %v2028_v30 = vcombine.low %v1751_v56, %v1753_v28  ;;  %v2949_v34 = vpop.f32.mrb[18].mxu0  ;;  %v2183_v53 = vsel %vm2101_vm2, %v2027_v27, -inf }
 0x1b2   :  { %v1754_v54 = vcombine.high %v1516_v63, %v1516_v63  ;;  %v1761_v43 = vrot.slane %v1516_v63, %v3460_v58  ;;  %v2497_v16 = vadd.f32 %v2949_v34, %v3957_v15  ;;  %v2491_v37 = vpop.f32.mrb[19].mxu0  ;;  %v2172_v44 = vmax.f32 %v2170_v4, %v2171_v36 }
 0x1b3   :  { %v2179_v2 = vmax.f32 %v2177_v13, %v2178_v33  ;;  %v2182_v25 = vsel %vm107_vm3, %v2020_v42, -inf  ;;  %v2492_v32 = vadd.f32 %v2491_v37, %v3957_v15  ;;  %v2036_v52 = vrot.slane %v2028_v30, %v3460_v58 }
 0x1b4   :  { %v2184_v1 = vmax.f32 %v2182_v25, %v2183_v53  ;;  %v1768_v41 = vrot.slane %v1754_v54, %v3460_v58  ;;  %v1769_v45 = vcombine.high %v1761_v43, %v1761_v43  ;;  %v2551_v8 = vmax.f32 %v2497_v16, 0.0 }
 0x1b5   :  { %v2550_v46 = vmax.f32 %v2492_v32, 0.0  ;;  %v2695_v47 = vsel %vm2670_vm1, %v2172_v44, %v2694_v14  ;;  %v2180_v40 = vrot.slane %v2179_v2, 1 }
 0x1b6   :  { %v2185_v57 = vrot.slane %v2184_v1, 4  ;;  %v2029_v31 = vcombine.low %v1761_v43, %v1769_v45  ;;  %v2569_v21 = vsel %vm107_vm3, %v2551_v8, -inf  ;;  %2699 = vrot.lane.b32.xlu0 %v2695_v47, %s3030_s26  ;;  %v2051_v49 = vrot.slane %v1768_v41, %v3460_v58 }
 0x1b7   :  { %v2570_v35 = vrot.slane %v2569_v21, 4  ;;  %v2562_v51 = vsel %vm107_vm3, %v2550_v46, -inf  ;;  %v1770_v20 = vcombine.high %v1768_v41, %v1768_v41  ;;  %v2181_v9 = vmax.f32 %v2179_v2, %v2180_v40 }
 0x1b8   :  { %v2186_v59 = vmax.f32 %v2184_v1, %v2185_v57  ;;  %v2043_v5 = vrot.slane %v2029_v31, %v3460_v58  ;;  %v2563_v38 = vrot.slane %v2562_v51, 4  ;;  %v1499_v60 = vpop.f32.mrb[28].mxu1  ;;  %v2192_v11 = vsel %vm2101_vm2, %v2051_v49, -inf }
 0x1b9   :  { %v2571_v18 = vmax.f32 %v2569_v21, %v2570_v35  ;;  %v1500_v3 = vadd.f32 %v1499_v60, %v3861_v55  ;;  %v2936_v62 = vpop.f32.mrb[29].mxu1 }
 0x1ba   :  { %v2187_v61 = vrot.slane %v2186_v59, 2  ;;  %v2044_v6 = vcombine.low %v2036_v52, %v2043_v5  ;;  %v2564_v39 = vmax.f32 %v2562_v51, %v2563_v38  ;;  %v2952_v24 = vpop.f32.mrb[20].mxu0 }
 0x1bb   :  { %v2572_v10 = vrot.slane %v2571_v18, 2  ;;  %v1517_v14 = vmax.f32 %v1500_v3, 0.0  ;;  %v2507_v50 = vadd.f32 %v2952_v24, %v3957_v15  ;;  %v2501_v12 = vpop.f32.mrb[21].mxu0 }
 0x1bc   :  { %v2191_v56 = vsel %vm107_vm3, %v2044_v6, -inf  ;;  %v2565_v19 = vrot.slane %v2564_v39, 2  ;;  %v2502_v17 = vadd.f32 %v2501_v12, %v3957_v15  ;;  %v2188_v55 = vmax.f32 %v2186_v59, %v2187_v61 }
 0x1bd   :  { %v2193_v0 = vmax.f32 %v2191_v56, %v2192_v11  ;;  %v2573_v22 = vmax.f32 %v2571_v18, %v2572_v10  ;;  %v1771_v23 = vcombine.high %v1517_v14, %v1517_v14  ;;  %v1778_v26 = vrot.slane %v1517_v14, %v3460_v58 }
 0x1be   :  { %v2566_v4 = vmax.f32 %v2564_v39, %v2565_v19  ;;  %v2553_v13 = vmax.f32 %v2507_v50, 0.0  ;;  %v2552_v28 = vmax.f32 %v2502_v17, 0.0  ;;  %v2189_v29 = vrot.slane %v2188_v55, 1 }
 0x1bf   :  { %v2194_v27 = vrot.slane %v2193_v0, 4  ;;  %v2574_v63 = vrot.slane %v2573_v22, 1  ;;  %v1785_v36 = vrot.slane %v1771_v23, %v3460_v58  ;;  %v1786_v33 = vcombine.high %v1778_v26, %v1778_v26 }
 0x1c0   :  { %v2567_v42 = vrot.slane %v2566_v4, 1  ;;  %v2052_v30 = vcombine.low %v1770_v20, %v1778_v26  ;;  %v2583_v34 = vsel %vm107_vm3, %v2553_v13, -inf  ;;  %v2576_v54 = vsel %vm107_vm3, %v2552_v28, -inf }
 0x1c1   :  { %v2195_v43 = vmax.f32 %v2193_v0, %v2194_v27  ;;  %v2575_v16 = vmax.f32 %v2573_v22, %v2574_v63  ;;  %v1787_v37 = vcombine.high %v1785_v36, %v1785_v36  ;;  %v2053_v44 = vcombine.low %v1786_v33, %v1785_v36 }
 0x1c2   :  { %v2568_v2 = vmax.f32 %v2566_v4, %v2567_v42  ;;  %v2060_v25 = vrot.slane %v2052_v30, %v3460_v58  ;;  %v2584_v53 = vrot.slane %v2583_v34, 4  ;;  %v2577_v32 = vrot.slane %v2576_v54, 4  ;;  %v2955_v1 = vpop.f32.mrb[22].mxu0 }
 0x1c3   :  { %v2067_v41 = vrot.slane %v2053_v44, %v3460_v58  ;;  %v2075_v45 = vrot.slane %v1787_v37, %v3460_v58  ;;  %v2517_v8 = vadd.f32 %v2955_v1, %v3957_v15  ;;  %v2511_v46 = vpop.f32.mrb[23].mxu0  ;;  %v2190_v47 = vmax.f32 %v2188_v55, %v2189_v29 }
 0x1c4   :  { %v2717_v57 = vsel %vm2658_vm11, %v2575_v16, %v2568_v2  ;;  %v2585_v31 = vmax.f32 %v2583_v34, %v2584_v53  ;;  %v2578_v21 = vmax.f32 %v2576_v54, %v2577_v32  ;;  %v2512_v40 = vadd.f32 %v2511_v46, %v3957_v15 }
 0x1c5   :  { %v2068_v49 = vcombine.low %v2060_v25, %v2067_v41  ;;  %v2555_v35 = vmax.f32 %v2517_v8, 0.0  ;;  %v2196_v51 = vrot.slane %v2195_v43, 2  ;;  %v2696_v38 = vsel %vm2658_vm11, %v2190_v47, %v2181_v9 }
 0x1c6   :  { %v2586_v52 = vrot.slane %v2585_v31, 2  ;;  %v2579_v59 = vrot.slane %v2578_v21, 2  ;;  %v2554_v5 = vmax.f32 %v2512_v40, 0.0  ;;  %v2201_v60 = vsel %vm2101_vm2, %v2075_v45, -inf }
 0x1c7   :  { %v2200_v58 = vsel %vm107_vm3, %v2068_v49, -inf  ;;  %v2597_v18 = vsel %vm107_vm3, %v2555_v35, -inf  ;;  %v2197_v3 = vmax.f32 %v2195_v43, %v2196_v51 }
 0x1c8   :  { %v2202_v20 = vmax.f32 %v2200_v58, %v2201_v60  ;;  %v2587_v62 = vmax.f32 %v2585_v31, %v2586_v52  ;;  %v2580_v61 = vmax.f32 %v2578_v21, %v2579_v59  ;;  %v2598_v6 = vrot.slane %v2597_v18, 4 }
 0x1c9   :  { %v2590_v39 = vsel %vm107_vm3, %v2554_v5, -inf  ;;  %v2198_v24 = vrot.slane %v2197_v3, 1 }
 0x1ca   :  { %v2588_v11 = vrot.slane %v2587_v62, 1  ;;  %v2581_v10 = vrot.slane %v2580_v61, 1  ;;  %v2599_v14 = vmax.f32 %v2597_v18, %v2598_v6  ;;  %v2591_v50 = vrot.slane %v2590_v39, 4  ;;  %v2958_v12 = vpop.f32.mrb[24].mxu0 }
 0x1cb   :  { %v2527_v9 = vadd.f32 %v2958_v12, %v3957_v15  ;;  %v2521_v56 = vpop.f32.mrb[25].mxu0  ;;  %v2199_v19 = vmax.f32 %v2197_v3, %v2198_v24  ;;  %v2203_v17 = vrot.slane %v2202_v20, 4 }
 0x1cc   :  { %v2589_v55 = vmax.f32 %v2587_v62, %v2588_v11  ;;  %v2582_v0 = vmax.f32 %v2580_v61, %v2581_v10  ;;  %v2600_v22 = vrot.slane %v2599_v14, 2  ;;  %v2592_v23 = vmax.f32 %v2590_v39, %v2591_v50 }
 0x1cd   :  { %v2557_v26 = vmax.f32 %v2527_v9, 0.0  ;;  %v2522_v4 = vadd.f32 %v2521_v56, %v3957_v15  ;;  %v2204_v13 = vmax.f32 %v2202_v20, %v2203_v17  ;;  %v2697_v28 = vsel %vm2660_vm12, %v2199_v19, %v2696_v38 }
 0x1ce   :  { %v2718_v29 = vsel %vm2660_vm12, %v2582_v0, %v2717_v57  ;;  %v2601_v27 = vmax.f32 %v2599_v14, %v2600_v22  ;;  %v2593_v63 = vrot.slane %v2592_v23, 2 }
 0x1cf   :  { %v2611_v36 = vsel %vm107_vm3, %v2557_v26, -inf  ;;  %v2556_v33 = vmax.f32 %v2522_v4, 0.0  ;;  %v2205_v42 = vrot.slane %v2204_v13, 2  ;;  %v2719_v30 = vsel %vm2662_vm13, %v2589_v55, %v2718_v29 }
 0x1d0   :  { %v2594_v34 = vmax.f32 %v2592_v23, %v2593_v63  ;;  %v2612_v54 = vrot.slane %v2611_v36, 4  ;;  %v2602_v43 = vrot.slane %v2601_v27, 1 }
 0x1d1   :  { %v2604_v16 = vsel %vm107_vm3, %v2556_v33, -inf  ;;  %v2206_v37 = vmax.f32 %v2204_v13, %v2205_v42 }
 0x1d2   :  { %v2595_v44 = vrot.slane %v2594_v34, 1  ;;  %v2613_v2 = vmax.f32 %v2611_v36, %v2612_v54  ;;  %v2605_v25 = vrot.slane %v2604_v16, 4  ;;  %v2961_v53 = vpop.f32.mrb[26].mxu0  ;;  %v2603_v57 = vmax.f32 %v2601_v27, %v2602_v43 }
 0x1d3   :  { %v2537_v32 = vadd.f32 %v2961_v53, %v3957_v15  ;;  %v2531_v1 = vpop.f32.mrb[27].mxu0  ;;  %v2207_v41 = vrot.slane %v2206_v37, 1 }
 0x1d4   :  { %v2596_v45 = vmax.f32 %v2594_v34, %v2595_v44  ;;  %v2614_v8 = vrot.slane %v2613_v2, 2  ;;  %v2606_v46 = vmax.f32 %v2604_v16, %v2605_v25  ;;  %v2532_v47 = vadd.f32 %v2531_v1, %v3957_v15 }
 0x1d5   :  { %v2559_v31 = vmax.f32 %v2537_v32, 0.0  ;;  %v2208_v21 = vmax.f32 %v2206_v37, %v2207_v41 }
 0x1d6   :  { %v2615_v40 = vmax.f32 %v2613_v2, %v2614_v8  ;;  %v2607_v49 = vrot.slane %v2606_v46, 2  ;;  %v2558_v35 = vmax.f32 %v2532_v47, 0.0  ;;  %v2720_v51 = vsel %vm2664_vm14, %v2596_v45, %v2719_v30 }
 0x1d7   :  { %v2625_v52 = vsel %vm107_vm3, %v2559_v31, -inf  ;;  %v2698_v59 = vsel %vm2662_vm13, %v2208_v21, %v2697_v28  ;;  %v2721_v5 = vsel %vm2666_vm15, %v2603_v57, %v2720_v51 }
 0x1d8   :  { %v2608_v38 = vmax.f32 %v2606_v46, %v2607_v49  ;;  %v2626_v58 = vrot.slane %v2625_v52, 4  ;;  %v2618_v60 = vsel %vm107_vm3, %v2558_v35, -inf  ;;  %2701 = vrot.lane.b32.xlu1 %v2698_v59, %s3030_s26  ;;  %v2616_v18 = vrot.slane %v2615_v40, 1 }
 0x1d9   :  { %v2619_v3 = vrot.slane %v2618_v60, 4 }
 0x1da   :  { %v2609_v20 = vrot.slane %v2608_v38, 1  ;;  %v2627_v62 = vmax.f32 %v2625_v52, %v2626_v58  ;;  %v2964_v61 = vpop.f32.mrb[28].mxu0  ;;  %v2617_v9 = vmax.f32 %v2615_v40, %v2616_v18 }
 0x1db   :  { %v2620_v6 = vmax.f32 %v2618_v60, %v2619_v3  ;;  %v2547_v39 = vadd.f32 %v2964_v61, %v3957_v15  ;;  %v2541_v24 = vpop.f32.mrb[29].mxu0 }
 0x1dc   :  { %v2610_v11 = vmax.f32 %v2608_v38, %v2609_v20  ;;  %v2628_v10 = vrot.slane %v2627_v62, 2  ;;  %v2542_v14 = vadd.f32 %v2541_v24, %v3957_v15 }
 0x1dd   :  { %v2621_v50 = vrot.slane %v2620_v6, 2  ;;  %v2561_v12 = vmax.f32 %v2547_v39, 0.0 }
 0x1de   :  { %v2629_v56 = vmax.f32 %v2627_v62, %v2628_v10  ;;  %v2560_v19 = vmax.f32 %v2542_v14, 0.0  ;;  %v2722_v17 = vsel %vm2668_vm0, %v2610_v11, %v2721_v5 }
 0x1df   :  { %v2622_v55 = vmax.f32 %v2620_v6, %v2621_v50  ;;  %v2639_v0 = vsel %vm107_vm3, %v2561_v12, -inf  ;;  %v2723_v22 = vsel %vm2670_vm1, %v2617_v9, %v2722_v17 }
 0x1e0   :  { %v2630_v23 = vrot.slane %v2629_v56, 1  ;;  %v2640_v26 = vrot.slane %v2639_v0, 4  ;;  %v2632_v4 = vsel %vm107_vm3, %v2560_v19, -inf  ;;  %2727 = vrot.lane.b32.xlu0 %v2723_v22, %s3031_s6 }
 0x1e1   :  { %v2623_v13 = vrot.slane %v2622_v55, 1  ;;  %v2633_v15 = vrot.slane %v2632_v4, 4 }
 0x1e2   :  { %v2631_v28 = vmax.f32 %v2629_v56, %v2630_v23  ;;  %v2641_v29 = vmax.f32 %v2639_v0, %v2640_v26 }
 0x1e3   :  { %v2624_v27 = vmax.f32 %v2622_v55, %v2623_v13  ;;  %v2634_v63 = vmax.f32 %v2632_v4, %v2633_v15 }
 0x1e4   :  { %v2642_v36 = vrot.slane %v2641_v29, 2 }
 0x1e5   :  { %v2635_v33 = vrot.slane %v2634_v63, 2  ;;  %v2724_v42 = vsel %vm2658_vm11, %v2631_v28, %v2624_v27 }
 0x1e6   :  { %v2643_v30 = vmax.f32 %v2641_v29, %v2642_v36 }
 0x1e7   :  { %v2636_v34 = vmax.f32 %v2634_v63, %v2635_v33 }
 0x1e8   :  { %v2644_v54 = vrot.slane %v2643_v30, 1 }
 0x1e9   :  { %v2637_v43 = vrot.slane %v2636_v34, 1 }
 0x1ea   :  { %v2645_v37 = vmax.f32 %v2643_v30, %v2644_v54 }
 0x1eb   :  { %v2638_v16 = vmax.f32 %v2636_v34, %v2637_v43 }
 0x1ed   :  { %v2725_v44 = vsel %vm2660_vm12, %v2638_v16, %v2724_v42 }
 0x1ee   :  { %v2726_v2 = vsel %vm2662_vm13, %v2645_v37, %v2725_v44 }
 0x1ef   :  { %2729 = vrot.lane.b32.xlu1 %v2726_v2, %s3031_s6  ;;  %s3006_s6 = scalar_lea.vmem %s2747_s15, 256 }
 0x1f0   :  { %p3007_p0 = scmp.ne.s32.totalorder %s2747_s15, %s3006_s6  ;;  %p3012_p2 = scmp.lt.s32.totalorder %s3006_s6, %s3006_s6 }
 0x1f2   :  { %p3013_p3 = por %p3012_p2, %p3011_p1 }
 0x1f4   :  { %p3014_p4 = pnand %p3013_p3, %p3007_p0 }
 0x228   :  { %v2700_v25 = vpop.permute.xlu0 %2699 }
 0x229   :  { %v2733_v53 = vsel %vm107_vm3, %v3854_v48, %v2700_v25 }
 0x24a   :  { %v2702_v45 = vpop.permute.xlu1 %2701 }
 0x24b   :  { %v2734_v8 = vsel %vm107_vm3, %v3859_v7, %v2702_v45 }
 0x252   :  { %v2728_v32 = vpop.permute.xlu0 %2727 }
 0x253   :  { %v2735_v1 = vsel %vm734_vm6, %v2733_v53, %v2728_v32 }
 0x254   :  { %v2737_v41 = vsel %vm1332_vm7, %v2735_v1, 0.0 }
 0x255   :  { %2739 = vst [vmem:[#allocation2] sm:$0xff] %v2737_v41 }
 0x261   :  { %v2730_v46 = vpop.permute.xlu1 %2729 }
 0x262   :  { %v2736_v47 = vsel %vm734_vm6, %v2734_v8, %v2730_v46 }
 0x263   :  { %v2738_v57 = vsel %vm1332_vm7, %v2736_v47, 0.0 }
 0x264   :  { %2740 = vst [vmem:[#allocation2 + $0x8] sm:$0xf] %v2738_v57 }
 0x265   :  { %3017 = shalt.err (!%p3014_p4)
}
 0x266   :  { %s3018_s18 = scalar_lea.hbm %s4044_s5, 256 }
 0x267   :  { %p3019_p5 = scmp.ne.s32.totalorder %s4044_s5, %s3018_s18  ;;  %p3022_p6 = scmp.lt.u32.totalorder %s3018_s18, %s4044_s5 }
 0x269   :  { %p3024_p7 = pnand %p3022_p6, %p3019_p5 }
 0x26b   :  { %3027 = shalt.err (!%p3024_p7)
}
 0x26c   :  { %s3041_s23 = smov 128  }
 0x26d   :  { %2752 = dma.vmem_to_hbm [thread:$0]  %s2747_s15, 256, %s4044_s5, [#allocation3], %s3041_s23, %s3041_s23, %s3030_s26  }
 0x26e   :  { %3028 = dma.done.wait [#allocation3], 256  }
 0x26f   :  { %3029 = vsyncadd [#allocation3], 4294967040 }
 0x270   :  { %2756 = vsyncpa [#allocation3], 1 }

</bundles_post_ra>
